<compile_context>
chip_gen: v7x
topology: tpu7x:2x2x1
jax: 0.10.0
libtpu: 0.0.40
codegen_flags: <defaults>
</compile_context>

<pallas_src>
import functools

import jax
import jax.numpy as jnp
from jax.experimental import pallas as pl
from jax.experimental.pallas import tpu as pltpu

N_SHARED_LAYERS = 3             # fc_blocks = nn.Sequential(*[FC_block]*3) -> one module, applied 3x
CLAMP_MIN, CLAMP_MAX = 1e-12, 1e12
BN_EPS = 1e-5
LANE = 128                      # TPU lane width
SUBLANE = 8                     # 32-bit sublane width
DEFAULT_BATCH_TILE = 256        # 256-row tiles feed the v6e/v7x 256-wide MXU


def _round_up(n, m):
    return ((n + m - 1) // m) * m


def _centerlossnet_kernel(x_ref, onehot_ref, w_in_ref, b_in_ref, w_mid_ref,
                          b_mid_ref, centers_ref, inlier_ref, *,
                          num_class, num_feature):
    """One batch tile: 4x (Linear + folded eval-BN + SiLU), then center distance.

    Shapes (padding done once in prepare_params / wrapper):
      x_ref       (TB, F_in)        bf16   (no feature pad; streamed per tile)
      onehot_ref  (TB, C_p)         f32    (streamed per tile)
      w_in_ref    (F_in, F_mid_p)   bf16   w_mid_ref (F_mid_p, F_mid_p) bf16
      b_in_ref    (1, F_mid_p)      f32    b_mid_ref (1, F_mid_p)       f32
      centers_ref (C_p, F_mid_p)    f32
      inlier_ref  (1, TB)           f32    (batch on the lane axis -> full-width vst)
    """

    def fc_block(h_bf16, w_ref, b_ref):
        # bf16 MXU operands / f32 accumulation; SiLU in f32 with the divide
        # pushed to the EUP via approx reciprocal (exp already lives there).
        z = jnp.dot(h_bf16, w_ref[...],
                    preferred_element_type=jnp.float32) + b_ref[...]
        return z * pl.reciprocal(1.0 + jnp.exp(-z), approx=True)

    h = fc_block(x_ref[...], w_in_ref, b_in_ref)            # fc_in (x already bf16)
    for _ in range(N_SHARED_LAYERS):                         # shared FC_block applied 3x
        h = fc_block(h.astype(jnp.bfloat16), w_mid_ref, b_mid_ref)

    f_pad = h.shape[1]

    # True-class center per row: one-hot(labels) @ centers -- one small MXU
    # matmul (exact row selection).  Padded class columns of the one-hot are 0;
    # padded batch rows are all-zero (sliced off in the wrapper).
    center_true = jnp.dot(onehot_ref[...], centers_ref[...],
                          preferred_element_type=jnp.float32)          # (TB, F_mid_p)

    d = h - center_true
    d2 = jnp.clip(d * d, CLAMP_MIN, CLAMP_MAX)                         # (TB, F_mid_p)

    # Feature sum + transpose fused into one NT matmul: (1,F_p) . (TB,F_p)^T -> (1,TB).
    # The 0/1 mask drops padded feature lanes (their clip(0)=CLAMP_MIN must not
    # count) and the result lands lane-dense, so the store is a full-width vst.
    feat_ids = jax.lax.broadcasted_iota(jnp.int32, (1, f_pad), 1)
    feat_mask = (feat_ids < num_feature).astype(jnp.float32)           # (1, F_mid_p)
    row_sums = jax.lax.dot_general(
        feat_mask, d2, (((1,), (1,)), ((), ())),
        preferred_element_type=jnp.float32)                            # (1, TB)

    # Mean over the ORIGINAL feature count, plus the clamp-of-zero constant the
    # (num_class - 1) non-matching classes contribute in the reference formula.
    inlier_ref[...] = (row_sums * (1.0 / num_feature)
                       + (num_class - 1) * CLAMP_MIN)


def prepare_params(w_in, b_in, w_mid, b_mid, centers):
    """One-time padding + bf16 casts of the resident tensors.

    Hoisted out of the per-call forward so these XLA copy/cast kernels over HBM
    do not re-run on every step.  Zero-padding is exact: padded output features
    get z=0 -> SiLU(0)=0, padded center rows/cols are zero.
    """
    in_features, mid_features = w_in.shape
    num_class = centers.shape[0]
    f_mid_p = _round_up(mid_features, LANE)
    c_p = _round_up(num_class, SUBLANE)
    f32 = jnp.float32

    w_in_p = (jnp.zeros((in_features, f_mid_p), f32)
              .at[:, :mid_features].set(w_in).astype(jnp.bfloat16))
    w_mid_p = (jnp.zeros((f_mid_p, f_mid_p), f32)
               .at[:mid_features, :mid_features].set(w_mid).astype(jnp.bfloat16))
    b_in_p = jnp.zeros((1, f_mid_p), f32).at[:, :mid_features].set(b_in)
    b_mid_p = jnp.zeros((1, f_mid_p), f32).at[:, :mid_features].set(b_mid)
    centers_p = (jnp.zeros((c_p, f_mid_p), f32)
                 .at[:num_class, :mid_features].set(centers))
    return dict(w_in=w_in_p, b_in=b_in_p, w_mid=w_mid_p, b_mid=b_mid_p,
                centers=centers_p, num_class=num_class,
                num_feature=mid_features, in_features=in_features)


def centerlossnet_forward(x, section_label, prepped, *, batch_tile=None):
    batch, in_features = x.shape
    assert in_features == prepped["in_features"]
    num_class = prepped["num_class"]
    mid_features = prepped["num_feature"]
    f_mid_p = prepped["w_mid"].shape[0]
    c_p = prepped["centers"].shape[0]

    # Lane-multiple batch tile, capped so we never pad a tiny batch past one tile.
    tb = batch_tile if batch_tile is not None else DEFAULT_BATCH_TILE
    tb = min(_round_up(tb, LANE), _round_up(batch, LANE))
    b_p = _round_up(batch, tb)

    # Per-call prep is restricted to the streamed tensors:
    #  * x in bf16 with no feature-axis padding (half the bytes, no 32->128 pad).
    #  * a lane-/sublane-friendly one-hot instead of a (TB,1) i32 labels block.
    x_p = (jnp.zeros((b_p, in_features), jnp.bfloat16)
           .at[:batch].set(x.astype(jnp.bfloat16)))
    oh = (section_label[:, None].astype(jnp.int32)
          == jnp.arange(c_p, dtype=jnp.int32)[None, :]).astype(jnp.float32)
    onehot_p = jnp.zeros((b_p, c_p), jnp.float32).at[:batch].set(oh)

    kernel = functools.partial(_centerlossnet_kernel,
                               num_class=num_class, num_feature=mid_features)

    grid = (b_p // tb,)
    out_specs = pl.BlockSpec((1, tb), lambda i: (0, i))      # lane-dense inlier output
    out_shape = jax.ShapeDtypeStruct((1, b_p), jnp.float32)
    args = (x_p, onehot_p, prepped["w_in"], prepped["b_in"],
            prepped["w_mid"], prepped["b_mid"], prepped["centers"])

    def build_in_specs(resident_kw):
        return [
            pl.BlockSpec((tb, in_features), lambda i: (i, 0)),         # x: streamed per tile
            pl.BlockSpec((tb, c_p), lambda i: (i, 0)),                 # one-hot: streamed
            pl.BlockSpec((in_features, f_mid_p), lambda i: (0, 0), **resident_kw),
            pl.BlockSpec((1, f_mid_p), lambda i: (0, 0), **resident_kw),
            pl.BlockSpec((f_mid_p, f_mid_p), lambda i: (0, 0), **resident_kw),
            pl.BlockSpec((1, f_mid_p), lambda i: (0, 0), **resident_kw),
            pl.BlockSpec((c_p, f_mid_p), lambda i: (0, 0), **resident_kw),
        ]

    def run(in_specs):
        return pl.pallas_call(
            kernel,
            grid=grid,
            in_specs=in_specs,
            out_specs=out_specs,
            out_shape=out_shape,
            compiler_params=pltpu.CompilerParams(
                dimension_semantics=("parallel",)),   # batch tiles independent; v7x shards 2 TCs
        )(*args)

    try:
        # Constant-index residents never re-DMA; single-buffer them so they don't
        # pay 2x VMEM (matters on v7x's 64 MiB VMEM at large mid_features).
        inlier_padded = run(build_in_specs({"pipeline_mode": pl.Buffered(1)}))
    except Exception:
        # Fallback for jax versions without pipeline_mode support on pallas_call.
        inlier_padded = run(build_in_specs({}))

    inlier = inlier_padded[0, :batch]            # drop padded batch rows
    loss = jnp.mean(inlier)                      # scalar loss computed wrapper-side
    return loss, inlier


def init_params(key, in_features, mid_features, num_class):
    ks = jax.random.split(key, 5)

    def linear_init(kw, kb, fan_in, fan_out):
        lim = 1.0 / jnp.sqrt(float(fan_in))
        W = jax.random.uniform(kw, (fan_out, fan_in), jnp.float32, -lim, lim)
        b = jax.random.uniform(kb, (fan_out,), jnp.float32, -lim, lim)
        return W, b

    W_in, bl_in = linear_init(ks[0], ks[1], in_features, mid_features)
    W_mid, bl_mid = linear_init(ks[2], ks[3], mid_features, mid_features)
    centers = jax.random.normal(ks[4], (num_class, mid_features), jnp.float32)

    # BatchNorm1d default init, eval mode: gamma=1, beta=0, mean=0, var=1.
    gamma = jnp.ones((mid_features,), jnp.float32)
    beta = jnp.zeros((mid_features,), jnp.float32)
    rmean = jnp.zeros((mid_features,), jnp.float32)
    rvar = jnp.ones((mid_features,), jnp.float32)

    def fold(W, b):
        s = gamma / jnp.sqrt(rvar + BN_EPS)
        Wt = W.T * s[None, :]                    # (in, out)
        bias = (b - rmean) * s + beta            # (out,)
        return Wt, bias.reshape(1, -1)

    w_in, b_in = fold(W_in, bl_in)
    w_mid, b_mid = fold(W_mid, bl_mid)
    return w_in, b_in, w_mid, b_mid, centers


def reference_forward(x, section_label, w_in, b_in, w_mid, b_mid, centers):
    # Pure-JAX reference mirroring the PyTorch eval path; matmuls use the same
    # bf16-operand / f32-accumulate numerics as the kernel (exact sigmoid).
    def fc(h, w, b):
        z = jnp.dot(h.astype(jnp.bfloat16), w.astype(jnp.bfloat16),
                    preferred_element_type=jnp.float32) + b
        return z * (1.0 / (1.0 + jnp.exp(-z)))

    h = fc(x, w_in, b_in)
    for _ in range(N_SHARED_LAYERS):
        h = fc(h, w_mid, b_mid)
    dist = (h[:, None, :] - centers[None, :, :]) ** 2
    mask = (section_label[:, None] == jnp.arange(centers.shape[0])[None, :])
    masked = dist * mask[:, :, None].astype(jnp.float32)
    inlier = jnp.clip(masked, CLAMP_MIN, CLAMP_MAX).sum(axis=1).mean(axis=1)
    return inlier.mean(), inlier


if __name__ == "__main__":
    in_features, num_class, batch = 32, 6, 8
    mid_features = in_features // 2

    key = jax.random.PRNGKey(0)
    kx, kl, kp = jax.random.split(key, 3)
    x = jax.random.normal(kx, (batch, in_features), jnp.float32)
    section_label = jax.random.randint(kl, (batch,), 0, num_class, jnp.int32)
    raw_params = init_params(kp, in_features, mid_features, num_class)
    prepped = prepare_params(*raw_params)        # one-time padding/bf16 prep (hoisted)

    loss, inlier = centerlossnet_forward(x, section_label, prepped)
    jax.block_until_ready((loss, inlier))

    ref_loss, ref_inlier = reference_forward(x, section_label, *raw_params)
    # Tolerance covers bf16 MXU operands + the EUP approx-reciprocal SiLU.
    assert jnp.allclose(loss, ref_loss, rtol=5e-3, atol=5e-3), (loss, ref_loss)
    assert jnp.allclose(inlier, ref_inlier, rtol=5e-3, atol=5e-3), (inlier, ref_inlier)

    print("KERNEL_OK")
</pallas_src>

<mosaic_0001>
module attributes {stable_mosaic.version = 11 : i64} {
  func.func @_centerlossnet_kernel(%arg0: i32, %arg1: memref<128x32xbf16, #tpu.memory_space<vmem>>, %arg2: memref<128x8xf32, #tpu.memory_space<vmem>>, %arg3: memref<32x128xbf16, #tpu.memory_space<vmem>>, %arg4: memref<1x128xf32, #tpu.memory_space<vmem>>, %arg5: memref<128x128xbf16, #tpu.memory_space<vmem>>, %arg6: memref<1x128xf32, #tpu.memory_space<vmem>>, %arg7: memref<8x128xf32, #tpu.memory_space<vmem>>, %arg8: memref<1x128xf32, #tpu.memory_space<vmem>>) attributes {dimension_semantics = [#tpu.dimension_semantics<parallel>], iteration_bounds = array<i64: 1>, scalar_prefetch = 0 : i64, scratch_operands = 0 : i64, tpu.core_type = #tpu.core_type<tc>, window_params = [{transform_indices = @transform_0, window_bounds = array<i64: 128, 32>}, {transform_indices = @transform_1, window_bounds = array<i64: 128, 8>}, {pipeline_mode = #tpu.pipeline_mode<synchronous>, transform_indices = @transform_2, window_bounds = array<i64: 32, 128>}, {pipeline_mode = #tpu.pipeline_mode<synchronous>, transform_indices = @transform_3, window_bounds = array<i64: 1, 128>}, {pipeline_mode = #tpu.pipeline_mode<synchronous>, transform_indices = @transform_4, window_bounds = array<i64: 128, 128>}, {pipeline_mode = #tpu.pipeline_mode<synchronous>, transform_indices = @transform_5, window_bounds = array<i64: 1, 128>}, {pipeline_mode = #tpu.pipeline_mode<synchronous>, transform_indices = @transform_6, window_bounds = array<i64: 8, 128>}, {transform_indices = @transform_7, window_bounds = array<i64: 1, 128>}]} {
    %c0 = arith.constant 0 : index
    %c0_0 = arith.constant 0 : index
    %0 = vector.load %arg1[%c0, %c0_0] : memref<128x32xbf16, #tpu.memory_space<vmem>>, vector<128x32xbf16>
    %c0_1 = arith.constant 0 : index
    %c0_2 = arith.constant 0 : index
    %1 = vector.load %arg3[%c0_1, %c0_2] : memref<32x128xbf16, #tpu.memory_space<vmem>>, vector<32x128xbf16>
    %cst = arith.constant dense<0.000000e+00> : vector<128x128xf32>
    %2 = tpu.matmul %0, %1, %cst {dimension_numbers = #tpu.dot_dimension_numbers<[1], [0], [0], [1], [0, 0, 1, 1], [], []>} : vector<128x32xbf16>, vector<32x128xbf16>, vector<128x128xf32> -> vector<128x128xf32>
    %c0_3 = arith.constant 0 : index
    %c0_4 = arith.constant 0 : index
    %3 = vector.load %arg4[%c0_3, %c0_4] : memref<1x128xf32, #tpu.memory_space<vmem>>, vector<1x128xf32>
    %4 = vector.broadcast %3 : vector<1x128xf32> to vector<128x128xf32>
    %5 = arith.addf %2, %4 : vector<128x128xf32>
    %cst_5 = arith.constant 0.000000e+00 : f32
    %6 = vector.broadcast %cst_5 : f32 to vector<128x128xf32>
    %7 = arith.subf %6, %5 : vector<128x128xf32>
    %8 = math.exp %7 : vector<128x128xf32>
    %cst_6 = arith.constant 1.000000e+00 : f32
    %9 = vector.broadcast %cst_6 : f32 to vector<128x128xf32>
    %10 = arith.addf %9, %8 : vector<128x128xf32>
    %11 = tpu.reciprocal %10 {approx = true} : vector<128x128xf32> -> vector<128x128xf32>
    %12 = arith.mulf %5, %11 : vector<128x128xf32>
    %13 = arith.truncf %12 : vector<128x128xf32> to vector<128x128xbf16>
    %c0_7 = arith.constant 0 : index
    %c0_8 = arith.constant 0 : index
    %14 = vector.load %arg5[%c0_7, %c0_8] : memref<128x128xbf16, #tpu.memory_space<vmem>>, vector<128x128xbf16>
    %cst_9 = arith.constant dense<0.000000e+00> : vector<128x128xf32>
    %15 = tpu.matmul %13, %14, %cst_9 {dimension_numbers = #tpu.dot_dimension_numbers<[1], [0], [0], [1], [0, 0, 1, 1], [], []>} : vector<128x128xbf16>, vector<128x128xbf16>, vector<128x128xf32> -> vector<128x128xf32>
    %c0_10 = arith.constant 0 : index
    %c0_11 = arith.constant 0 : index
    %16 = vector.load %arg6[%c0_10, %c0_11] : memref<1x128xf32, #tpu.memory_space<vmem>>, vector<1x128xf32>
    %17 = vector.broadcast %16 : vector<1x128xf32> to vector<128x128xf32>
    %18 = arith.addf %15, %17 : vector<128x128xf32>
    %cst_12 = arith.constant 0.000000e+00 : f32
    %19 = vector.broadcast %cst_12 : f32 to vector<128x128xf32>
    %20 = arith.subf %19, %18 : vector<128x128xf32>
    %21 = math.exp %20 : vector<128x128xf32>
    %cst_13 = arith.constant 1.000000e+00 : f32
    %22 = vector.broadcast %cst_13 : f32 to vector<128x128xf32>
    %23 = arith.addf %22, %21 : vector<128x128xf32>
    %24 = tpu.reciprocal %23 {approx = true} : vector<128x128xf32> -> vector<128x128xf32>
    %25 = arith.mulf %18, %24 : vector<128x128xf32>
    %26 = arith.truncf %25 : vector<128x128xf32> to vector<128x128xbf16>
    %c0_14 = arith.constant 0 : index
    %c0_15 = arith.constant 0 : index
    %27 = vector.load %arg5[%c0_14, %c0_15] : memref<128x128xbf16, #tpu.memory_space<vmem>>, vector<128x128xbf16>
    %cst_16 = arith.constant dense<0.000000e+00> : vector<128x128xf32>
    %28 = tpu.matmul %26, %27, %cst_16 {dimension_numbers = #tpu.dot_dimension_numbers<[1], [0], [0], [1], [0, 0, 1, 1], [], []>} : vector<128x128xbf16>, vector<128x128xbf16>, vector<128x128xf32> -> vector<128x128xf32>
    %c0_17 = arith.constant 0 : index
    %c0_18 = arith.constant 0 : index
    %29 = vector.load %arg6[%c0_17, %c0_18] : memref<1x128xf32, #tpu.memory_space<vmem>>, vector<1x128xf32>
    %30 = vector.broadcast %29 : vector<1x128xf32> to vector<128x128xf32>
    %31 = arith.addf %28, %30 : vector<128x128xf32>
    %cst_19 = arith.constant 0.000000e+00 : f32
    %32 = vector.broadcast %cst_19 : f32 to vector<128x128xf32>
    %33 = arith.subf %32, %31 : vector<128x128xf32>
    %34 = math.exp %33 : vector<128x128xf32>
    %cst_20 = arith.constant 1.000000e+00 : f32
    %35 = vector.broadcast %cst_20 : f32 to vector<128x128xf32>
    %36 = arith.addf %35, %34 : vector<128x128xf32>
    %37 = tpu.reciprocal %36 {approx = true} : vector<128x128xf32> -> vector<128x128xf32>
    %38 = arith.mulf %31, %37 : vector<128x128xf32>
    %39 = arith.truncf %38 : vector<128x128xf32> to vector<128x128xbf16>
    %c0_21 = arith.constant 0 : index
    %c0_22 = arith.constant 0 : index
    %40 = vector.load %arg5[%c0_21, %c0_22] : memref<128x128xbf16, #tpu.memory_space<vmem>>, vector<128x128xbf16>
    %cst_23 = arith.constant dense<0.000000e+00> : vector<128x128xf32>
    %41 = tpu.matmul %39, %40, %cst_23 {dimension_numbers = #tpu.dot_dimension_numbers<[1], [0], [0], [1], [0, 0, 1, 1], [], []>} : vector<128x128xbf16>, vector<128x128xbf16>, vector<128x128xf32> -> vector<128x128xf32>
    %c0_24 = arith.constant 0 : index
    %c0_25 = arith.constant 0 : index
    %42 = vector.load %arg6[%c0_24, %c0_25] : memref<1x128xf32, #tpu.memory_space<vmem>>, vector<1x128xf32>
    %43 = vector.broadcast %42 : vector<1x128xf32> to vector<128x128xf32>
    %44 = arith.addf %41, %43 : vector<128x128xf32>
    %cst_26 = arith.constant 0.000000e+00 : f32
    %45 = vector.broadcast %cst_26 : f32 to vector<128x128xf32>
    %46 = arith.subf %45, %44 : vector<128x128xf32>
    %47 = math.exp %46 : vector<128x128xf32>
    %cst_27 = arith.constant 1.000000e+00 : f32
    %48 = vector.broadcast %cst_27 : f32 to vector<128x128xf32>
    %49 = arith.addf %48, %47 : vector<128x128xf32>
    %50 = tpu.reciprocal %49 {approx = true} : vector<128x128xf32> -> vector<128x128xf32>
    %51 = arith.mulf %44, %50 : vector<128x128xf32>
    %c0_28 = arith.constant 0 : index
    %c0_29 = arith.constant 0 : index
    %52 = vector.load %arg2[%c0_28, %c0_29] : memref<128x8xf32, #tpu.memory_space<vmem>>, vector<128x8xf32>
    %c0_30 = arith.constant 0 : index
    %c0_31 = arith.constant 0 : index
    %53 = vector.load %arg7[%c0_30, %c0_31] : memref<8x128xf32, #tpu.memory_space<vmem>>, vector<8x128xf32>
    %cst_32 = arith.constant dense<0.000000e+00> : vector<128x128xf32>
    %54 = tpu.matmul %52, %53, %cst_32 {dimension_numbers = #tpu.dot_dimension_numbers<[1], [0], [0], [1], [0, 0, 1, 1], [], []>} : vector<128x8xf32>, vector<8x128xf32>, vector<128x128xf32> -> vector<128x128xf32>
    %55 = arith.subf %51, %54 : vector<128x128xf32>
    %56 = arith.mulf %55, %55 : vector<128x128xf32>
    %cst_33 = arith.constant 9.99999996E-13 : f32
    %cst_34 = arith.constant 9.99999995E+11 : f32
    %57 = vector.broadcast %cst_33 : f32 to vector<128x128xf32>
    %58 = arith.maximumf %57, %56 : vector<128x128xf32>
    %59 = vector.broadcast %cst_34 : f32 to vector<128x128xf32>
    %60 = arith.minimumf %59, %58 : vector<128x128xf32>
    %61 = tpu.iota {dimensions = array<i32: 1>} : vector<1x128xi32>
    %c16_i32 = arith.constant 16 : i32
    %62 = vector.broadcast %c16_i32 : i32 to vector<1x128xi32>
    %63 = arith.cmpi slt, %61, %62 : vector<1x128xi32>
    %64 = arith.extui %63 : vector<1x128xi1> to vector<1x128xi32>
    %65 = arith.sitofp %64 : vector<1x128xi32> to vector<1x128xf32>
    %cst_35 = arith.constant dense<0.000000e+00> : vector<1x128xf32>
    %66 = tpu.matmul %65, %60, %cst_35 {dimension_numbers = #tpu.dot_dimension_numbers<[1], [1], [0], [0], [0, 0, 1, 0], [], []>} : vector<1x128xf32>, vector<128x128xf32>, vector<1x128xf32> -> vector<1x128xf32>
    %cst_36 = arith.constant 6.250000e-02 : f32
    %67 = vector.broadcast %cst_36 : f32 to vector<1x128xf32>
    %68 = arith.mulf %66, %67 : vector<1x128xf32>
    %cst_37 = arith.constant 5.000000e-12 : f32
    %69 = vector.broadcast %cst_37 : f32 to vector<1x128xf32>
    %70 = arith.addf %68, %69 : vector<1x128xf32>
    %c0_38 = arith.constant 0 : index
    %c0_39 = arith.constant 0 : index
    %71 = vector.load %arg8[%c0_38, %c0_39] : memref<1x128xf32, #tpu.memory_space<vmem>>, vector<1x128xf32>
    tpu.vector_store %arg8[%c0_38, %c0_39], %70 {strides = array<i32>} : memref<1x128xf32, #tpu.memory_space<vmem>>, vector<1x128xf32>,
    return
  }
  func.func @transform_0(%arg0: i32) -> (i32, i32) {
    %c0_i32 = arith.constant 0 : i32
    %c0_i32_0 = arith.constant 0 : i32
    return %arg0, %c0_i32 : i32, i32
  }
  func.func @transform_1(%arg0: i32) -> (i32, i32) {
    %c0_i32 = arith.constant 0 : i32
    %c0_i32_0 = arith.constant 0 : i32
    return %arg0, %c0_i32 : i32, i32
  }
  func.func @transform_2(%arg0: i32) -> (i32, i32) {
    %c0_i32 = arith.constant 0 : i32
    %c0_i32_0 = arith.constant 0 : i32
    %c0_i32_1 = arith.constant 0 : i32
    return %c0_i32, %c0_i32_0 : i32, i32
  }
  func.func @transform_3(%arg0: i32) -> (i32, i32) {
    %c0_i32 = arith.constant 0 : i32
    %c0_i32_0 = arith.constant 0 : i32
    %c0_i32_1 = arith.constant 0 : i32
    return %c0_i32, %c0_i32_0 : i32, i32
  }
  func.func @transform_4(%arg0: i32) -> (i32, i32) {
    %c0_i32 = arith.constant 0 : i32
    %c0_i32_0 = arith.constant 0 : i32
    %c0_i32_1 = arith.constant 0 : i32
    return %c0_i32, %c0_i32_0 : i32, i32
  }
  func.func @transform_5(%arg0: i32) -> (i32, i32) {
    %c0_i32 = arith.constant 0 : i32
    %c0_i32_0 = arith.constant 0 : i32
    %c0_i32_1 = arith.constant 0 : i32
    return %c0_i32, %c0_i32_0 : i32, i32
  }
  func.func @transform_6(%arg0: i32) -> (i32, i32) {
    %c0_i32 = arith.constant 0 : i32
    %c0_i32_0 = arith.constant 0 : i32
    %c0_i32_1 = arith.constant 0 : i32
    return %c0_i32, %c0_i32_0 : i32, i32
  }
  func.func @transform_7(%arg0: i32) -> (i32, i32) {
    %c0_i32 = arith.constant 0 : i32
    %c0_i32_0 = arith.constant 0 : i32
    return %c0_i32, %arg0 : i32, i32
  }
}

module attributes {stable_mosaic.version = 11 : i64} {
  func.func @_centerlossnet_kernel(%arg0: i32, %arg1: memref<128x32xbf16, #tpu.memory_space<vmem>>, %arg2: memref<128x8xf32, #tpu.memory_space<vmem>>, %arg3: memref<32x128xbf16, #tpu.memory_space<vmem>>, %arg4: memref<1x128xf32, #tpu.memory_space<vmem>>, %arg5: memref<128x128xbf16, #tpu.memory_space<vmem>>, %arg6: memref<1x128xf32, #tpu.memory_space<vmem>>, %arg7: memref<8x128xf32, #tpu.memory_space<vmem>>, %arg8: memref<1x128xf32, #tpu.memory_space<vmem>>) attributes {dimension_semantics = [#tpu.dimension_semantics<parallel>], iteration_bounds = array<i64: 1>, scalar_prefetch = 0 : i64, scratch_operands = 0 : i64, tpu.core_type = #tpu.core_type<tc>, window_params = [{transform_indices = @transform_0, window_bounds = array<i64: 128, 32>}, {transform_indices = @transform_1, window_bounds = array<i64: 128, 8>}, {pipeline_mode = #tpu.pipeline_mode<synchronous>, transform_indices = @transform_2, window_bounds = array<i64: 32, 128>}, {pipeline_mode = #tpu.pipeline_mode<synchronous>, transform_indices = @transform_3, window_bounds = array<i64: 1, 128>}, {pipeline_mode = #tpu.pipeline_mode<synchronous>, transform_indices = @transform_4, window_bounds = array<i64: 128, 128>}, {pipeline_mode = #tpu.pipeline_mode<synchronous>, transform_indices = @transform_5, window_bounds = array<i64: 1, 128>}, {pipeline_mode = #tpu.pipeline_mode<synchronous>, transform_indices = @transform_6, window_bounds = array<i64: 8, 128>}, {transform_indices = @transform_7, window_bounds = array<i64: 1, 128>}]} {
    %c0 = arith.constant 0 : index
    %c0_0 = arith.constant 0 : index
    %0 = vector.load %arg1[%c0, %c0_0] : memref<128x32xbf16, #tpu.memory_space<vmem>>, vector<128x32xbf16>
    %c0_1 = arith.constant 0 : index
    %c0_2 = arith.constant 0 : index
    %1 = vector.load %arg3[%c0_1, %c0_2] : memref<32x128xbf16, #tpu.memory_space<vmem>>, vector<32x128xbf16>
    %cst = arith.constant dense<0.000000e+00> : vector<128x128xf32>
    %2 = tpu.matmul %0, %1, %cst {dimension_numbers = #tpu.dot_dimension_numbers<[1], [0], [0], [1], [0, 0, 1, 1], [], []>} : vector<128x32xbf16>, vector<32x128xbf16>, vector<128x128xf32> -> vector<128x128xf32>
    %c0_3 = arith.constant 0 : index
    %c0_4 = arith.constant 0 : index
    %3 = vector.load %arg4[%c0_3, %c0_4] : memref<1x128xf32, #tpu.memory_space<vmem>>, vector<1x128xf32>
    %4 = vector.broadcast %3 : vector<1x128xf32> to vector<128x128xf32>
    %5 = arith.addf %2, %4 : vector<128x128xf32>
    %cst_5 = arith.constant 0.000000e+00 : f32
    %6 = vector.broadcast %cst_5 : f32 to vector<128x128xf32>
    %7 = arith.subf %6, %5 : vector<128x128xf32>
    %8 = math.exp %7 : vector<128x128xf32>
    %cst_6 = arith.constant 1.000000e+00 : f32
    %9 = vector.broadcast %cst_6 : f32 to vector<128x128xf32>
    %10 = arith.addf %9, %8 : vector<128x128xf32>
    %11 = tpu.reciprocal %10 {approx = true} : vector<128x128xf32> -> vector<128x128xf32>
    %12 = arith.mulf %5, %11 : vector<128x128xf32>
    %13 = arith.truncf %12 : vector<128x128xf32> to vector<128x128xbf16>
    %c0_7 = arith.constant 0 : index
    %c0_8 = arith.constant 0 : index
    %14 = vector.load %arg5[%c0_7, %c0_8] : memref<128x128xbf16, #tpu.memory_space<vmem>>, vector<128x128xbf16>
    %cst_9 = arith.constant dense<0.000000e+00> : vector<128x128xf32>
    %15 = tpu.matmul %13, %14, %cst_9 {dimension_numbers = #tpu.dot_dimension_numbers<[1], [0], [0], [1], [0, 0, 1, 1], [], []>} : vector<128x128xbf16>, vector<128x128xbf16>, vector<128x128xf32> -> vector<128x128xf32>
    %c0_10 = arith.constant 0 : index
    %c0_11 = arith.constant 0 : index
    %16 = vector.load %arg6[%c0_10, %c0_11] : memref<1x128xf32, #tpu.memory_space<vmem>>, vector<1x128xf32>
    %17 = vector.broadcast %16 : vector<1x128xf32> to vector<128x128xf32>
    %18 = arith.addf %15, %17 : vector<128x128xf32>
    %cst_12 = arith.constant 0.000000e+00 : f32
    %19 = vector.broadcast %cst_12 : f32 to vector<128x128xf32>
    %20 = arith.subf %19, %18 : vector<128x128xf32>
    %21 = math.exp %20 : vector<128x128xf32>
    %cst_13 = arith.constant 1.000000e+00 : f32
    %22 = vector.broadcast %cst_13 : f32 to vector<128x128xf32>
    %23 = arith.addf %22, %21 : vector<128x128xf32>
    %24 = tpu.reciprocal %23 {approx = true} : vector<128x128xf32> -> vector<128x128xf32>
    %25 = arith.mulf %18, %24 : vector<128x128xf32>
    %26 = arith.truncf %25 : vector<128x128xf32> to vector<128x128xbf16>
    %c0_14 = arith.constant 0 : index
    %c0_15 = arith.constant 0 : index
    %27 = vector.load %arg5[%c0_14, %c0_15] : memref<128x128xbf16, #tpu.memory_space<vmem>>, vector<128x128xbf16>
    %cst_16 = arith.constant dense<0.000000e+00> : vector<128x128xf32>
    %28 = tpu.matmul %26, %27, %cst_16 {dimension_numbers = #tpu.dot_dimension_numbers<[1], [0], [0], [1], [0, 0, 1, 1], [], []>} : vector<128x128xbf16>, vector<128x128xbf16>, vector<128x128xf32> -> vector<128x128xf32>
    %c0_17 = arith.constant 0 : index
    %c0_18 = arith.constant 0 : index
    %29 = vector.load %arg6[%c0_17, %c0_18] : memref<1x128xf32, #tpu.memory_space<vmem>>, vector<1x128xf32>
    %30 = vector.broadcast %29 : vector<1x128xf32> to vector<128x128xf32>
    %31 = arith.addf %28, %30 : vector<128x128xf32>
    %cst_19 = arith.constant 0.000000e+00 : f32
    %32 = vector.broadcast %cst_19 : f32 to vector<128x128xf32>
    %33 = arith.subf %32, %31 : vector<128x128xf32>
    %34 = math.exp %33 : vector<128x128xf32>
    %cst_20 = arith.constant 1.000000e+00 : f32
    %35 = vector.broadcast %cst_20 : f32 to vector<128x128xf32>
    %36 = arith.addf %35, %34 : vector<128x128xf32>
    %37 = tpu.reciprocal %36 {approx = true} : vector<128x128xf32> -> vector<128x128xf32>
    %38 = arith.mulf %31, %37 : vector<128x128xf32>
    %39 = arith.truncf %38 : vector<128x128xf32> to vector<128x128xbf16>
    %c0_21 = arith.constant 0 : index
    %c0_22 = arith.constant 0 : index
    %40 = vector.load %arg5[%c0_21, %c0_22] : memref<128x128xbf16, #tpu.memory_space<vmem>>, vector<128x128xbf16>
    %cst_23 = arith.constant dense<0.000000e+00> : vector<128x128xf32>
    %41 = tpu.matmul %39, %40, %cst_23 {dimension_numbers = #tpu.dot_dimension_numbers<[1], [0], [0], [1], [0, 0, 1, 1], [], []>} : vector<128x128xbf16>, vector<128x128xbf16>, vector<128x128xf32> -> vector<128x128xf32>
    %c0_24 = arith.constant 0 : index
    %c0_25 = arith.constant 0 : index
    %42 = vector.load %arg6[%c0_24, %c0_25] : memref<1x128xf32, #tpu.memory_space<vmem>>, vector<1x128xf32>
    %43 = vector.broadcast %42 : vector<1x128xf32> to vector<128x128xf32>
    %44 = arith.addf %41, %43 : vector<128x128xf32>
    %cst_26 = arith.constant 0.000000e+00 : f32
    %45 = vector.broadcast %cst_26 : f32 to vector<128x128xf32>
    %46 = arith.subf %45, %44 : vector<128x128xf32>
    %47 = math.exp %46 : vector<128x128xf32>
    %cst_27 = arith.constant 1.000000e+00 : f32
    %48 = vector.broadcast %cst_27 : f32 to vector<128x128xf32>
    %49 = arith.addf %48, %47 : vector<128x128xf32>
    %50 = tpu.reciprocal %49 {approx = true} : vector<128x128xf32> -> vector<128x128xf32>
    %51 = arith.mulf %44, %50 : vector<128x128xf32>
    %c0_28 = arith.constant 0 : index
    %c0_29 = arith.constant 0 : index
    %52 = vector.load %arg2[%c0_28, %c0_29] : memref<128x8xf32, #tpu.memory_space<vmem>>, vector<128x8xf32>
    %c0_30 = arith.constant 0 : index
    %c0_31 = arith.constant 0 : index
    %53 = vector.load %arg7[%c0_30, %c0_31] : memref<8x128xf32, #tpu.memory_space<vmem>>, vector<8x128xf32>
    %cst_32 = arith.constant dense<0.000000e+00> : vector<128x128xf32>
    %54 = tpu.matmul %52, %53, %cst_32 {dimension_numbers = #tpu.dot_dimension_numbers<[1], [0], [0], [1], [0, 0, 1, 1], [], []>} : vector<128x8xf32>, vector<8x128xf32>, vector<128x128xf32> -> vector<128x128xf32>
    %55 = arith.subf %51, %54 : vector<128x128xf32>
    %56 = arith.mulf %55, %55 : vector<128x128xf32>
    %cst_33 = arith.constant 9.99999996E-13 : f32
    %cst_34 = arith.constant 9.99999995E+11 : f32
    %57 = vector.broadcast %cst_33 : f32 to vector<128x128xf32>
    %58 = arith.maximumf %57, %56 : vector<128x128xf32>
    %59 = vector.broadcast %cst_34 : f32 to vector<128x128xf32>
    %60 = arith.minimumf %59, %58 : vector<128x128xf32>
    %61 = tpu.iota {dimensions = array<i32: 1>} : vector<1x128xi32>
    %c16_i32 = arith.constant 16 : i32
    %62 = vector.broadcast %c16_i32 : i32 to vector<1x128xi32>
    %63 = arith.cmpi slt, %61, %62 : vector<1x128xi32>
    %64 = arith.extui %63 : vector<1x128xi1> to vector<1x128xi32>
    %65 = arith.sitofp %64 : vector<1x128xi32> to vector<1x128xf32>
    %cst_35 = arith.constant dense<0.000000e+00> : vector<1x128xf32>
    %66 = tpu.matmul %65, %60, %cst_35 {dimension_numbers = #tpu.dot_dimension_numbers<[1], [1], [0], [0], [0, 0, 1, 0], [], []>} : vector<1x128xf32>, vector<128x128xf32>, vector<1x128xf32> -> vector<1x128xf32>
    %cst_36 = arith.constant 6.250000e-02 : f32
    %67 = vector.broadcast %cst_36 : f32 to vector<1x128xf32>
    %68 = arith.mulf %66, %67 : vector<1x128xf32>
    %cst_37 = arith.constant 5.000000e-12 : f32
    %69 = vector.broadcast %cst_37 : f32 to vector<1x128xf32>
    %70 = arith.addf %68, %69 : vector<1x128xf32>
    %c0_38 = arith.constant 0 : index
    %c0_39 = arith.constant 0 : index
    %71 = vector.load %arg8[%c0_38, %c0_39] : memref<1x128xf32, #tpu.memory_space<vmem>>, vector<1x128xf32>
    tpu.vector_store %arg8[%c0_38, %c0_39], %70 {strides = array<i32>} : memref<1x128xf32, #tpu.memory_space<vmem>>, vector<1x128xf32>,
    return
  }
  func.func @transform_0(%arg0: i32) -> (i32, i32) {
    %c0_i32 = arith.constant 0 : i32
    %c0_i32_0 = arith.constant 0 : i32
    return %arg0, %c0_i32 : i32, i32
  }
  func.func @transform_1(%arg0: i32) -> (i32, i32) {
    %c0_i32 = arith.constant 0 : i32
    %c0_i32_0 = arith.constant 0 : i32
    return %arg0, %c0_i32 : i32, i32
  }
  func.func @transform_2(%arg0: i32) -> (i32, i32) {
    %c0_i32 = arith.constant 0 : i32
    %c0_i32_0 = arith.constant 0 : i32
    %c0_i32_1 = arith.constant 0 : i32
    return %c0_i32, %c0_i32_0 : i32, i32
  }
  func.func @transform_3(%arg0: i32) -> (i32, i32) {
    %c0_i32 = arith.constant 0 : i32
    %c0_i32_0 = arith.constant 0 : i32
    %c0_i32_1 = arith.constant 0 : i32
    return %c0_i32, %c0_i32_0 : i32, i32
  }
  func.func @transform_4(%arg0: i32) -> (i32, i32) {
    %c0_i32 = arith.constant 0 : i32
    %c0_i32_0 = arith.constant 0 : i32
    %c0_i32_1 = arith.constant 0 : i32
    return %c0_i32, %c0_i32_0 : i32, i32
  }
  func.func @transform_5(%arg0: i32) -> (i32, i32) {
    %c0_i32 = arith.constant 0 : i32
    %c0_i32_0 = arith.constant 0 : i32
    %c0_i32_1 = arith.constant 0 : i32
    return %c0_i32, %c0_i32_0 : i32, i32
  }
  func.func @transform_6(%arg0: i32) -> (i32, i32) {
    %c0_i32 = arith.constant 0 : i32
    %c0_i32_0 = arith.constant 0 : i32
    %c0_i32_1 = arith.constant 0 : i32
    return %c0_i32, %c0_i32_0 : i32, i32
  }
  func.func @transform_7(%arg0: i32) -> (i32, i32) {
    %c0_i32 = arith.constant 0 : i32
    %c0_i32_0 = arith.constant 0 : i32
    return %c0_i32, %arg0 : i32, i32
  }
}

</mosaic_0001>

<bundles_post_ra>
// kernel: tpu_custom_call.1
= control target key start
LH: loop header
LB: loop body
LE: loop exit
PB: predicated region body
PF: predicated region fallthrough
CT: control target
= control target key end

     0   :  { %vm107_vm0 = vcmask 261120   ;;  %s2644_s0 = inlined_call_operand.vmem [shape: bf16[128,32], index: 0, kind: input, shape index: {}]   ;;  %s2645_s1 = inlined_call_operand.vmem [shape: f32[128,8], index: 1, kind: input, shape index: {}]   ;;  %s2646_s2 = inlined_call_operand.vmem [shape: bf16[32,128], index: 2, kind: input, shape index: {}]   ;;  %s2647_s3 = inlined_call_operand.vmem [shape: f32[1,128], index: 3, kind: input, shape index: {}]   ;;  %s2648_s4 = inlined_call_operand.vmem [shape: bf16[128,128], index: 4, kind: input, shape index: {}]   ;;  %s2649_s5 = inlined_call_operand.vmem [shape: f32[1,128], index: 5, kind: input, shape index: {}]   ;;  %s2650_s6 = inlined_call_operand.vmem [shape: f32[8,128], index: 6, kind: input, shape index: {}]   ;;  %s2651_s7 = inlined_call_operand.hbm [shape: f32[1,128], index: 7, kind: output, shape index: {}]  }
   0x1   :  { %v1710_v0 = vld [vmem:[%s2646_s2] sm:$0xff]   ;;  %v1711_v1 = vld [vmem:[%s2646_s2 + $0x8] sm:$0xff]   ;;  %v1714_v4 = vld [vmem:[%s2644_s0 + $0x10] sm:$0xff]  }
   0x2   :  { %1504 = vmatprep.subr.bf16.mxu0 %v1710_v0  ;;  %v1712_v2 = vld [vmem:[%s2644_s0] sm:$0xff]   ;;  %v1713_v3 = vld [vmem:[%s2644_s0 + $0x8] sm:$0xff]   ;;  %v1715_v5 = vld [vmem:[%s2644_s0 + $0x18] sm:$0xff]  }
   0x3   :  { %1505 = vmatpush3.bf16.msra.mxu0 %v1710_v0  ;;  %1508 = vmatprep.mubr.msk.bf16.mxu0 %vm107_vm0, %v1712_v2  ;;  %v1716_v6 = vld [vmem:[%s2644_s0 + $0x20] sm:$0xff]  }
   0x4   :  { %1506 = vmatprep.subr.bf16.mxu0 %v1711_v1 }
   0x7   :  { %1507 = vmatpush3.bf16.msra.mxu0 %v1711_v1 }
   0xa   :  { %1509 = vmatmul.mubr.msk.bf16.vlgmr.msra.gmra.mrb[0].mxu0 %vm107_vm0, %v1713_v3 }
   0xb   :  { %1512 = vmatprep.mubr.msk.bf16.mxu0 %vm107_vm0, %v1714_v4 }
   0xc   :  { %12 = vsyncpa [#allocation3], 0  ;;  %v1717_v7 = vld [vmem:[%s2644_s0 + $0x28] sm:$0xff]   ;;  %v1718_v8 = vld [vmem:[%s2644_s0 + $0x30] sm:$0xff]   ;;  %vm1016_vm1 = vcmask 64512   ;;  %vm2009_vm2 = vmmov 0  }
   0xd   :  { %v1719_v9 = vld [vmem:[%s2644_s0 + $0x38] sm:$0xff]   ;;  %v2094_v10 = vld [vmem:[%s2648_s4] sm:$0xff]   ;;  %v2103_v11 = vld [vmem:[%s2648_s4 + $0x8] sm:$0xff]  }
   0xe   :  { %1524 = vmatprep.subr.bf16.mxu1 %v2094_v10  ;;  %1556 = vmatprep.subr.bf16.mxu0 %v2094_v10  ;;  %v2112_v12 = vld [vmem:[%s2648_s4 + $0x10] sm:$0xff]   ;;  %v2121_v13 = vld [vmem:[%s2648_s4 + $0x18] sm:$0xff]   ;;  %v2130_v14 = vld [vmem:[%s2648_s4 + $0x20] sm:$0xff]  }
   0xf   :  { %1525 = vmatpush3.bf16.msra.mxu1 %v2094_v10  ;;  %1557 = vmatpush3.bf16.msra.mxu0 %v2094_v10  ;;  %v2139_v15 = vld [vmem:[%s2648_s4 + $0x28] sm:$0xff]   ;;  %v2148_v16 = vld [vmem:[%s2648_s4 + $0x30] sm:$0xff]   ;;  %v2157_v17 = vld [vmem:[%s2648_s4 + $0x38] sm:$0xff]  }
  0x10   :  { %1526 = vmatprep.subr.bf16.mxu1 %v2103_v11  ;;  %1558 = vmatprep.subr.bf16.mxu0 %v2103_v11  ;;  %v2167_v18 = vld [vmem:[%s2647_s3] ss:$0 sm:$0xff] }
  0x12   :  { %1513 = vmatmul.mubr.msk.bf16.gmra.mrb[4].mxu0 %vm107_vm0, %v1715_v5 }
  0x13   :  { %1516 = vmatprep.mubr.msk.bf16.mxu0 %vm107_vm0, %v1716_v6  ;;  %1527 = vmatpush3.bf16.msra.mxu1 %v2103_v11 }
  0x14   :  { %1559 = vmatpush3.bf16.msra.mxu0 %v2103_v11  ;;  %1528 = vmatprep.subr.bf16.mxu1 %v2112_v12 }
  0x15   :  { %1560 = vmatprep.subr.bf16.mxu0 %v2112_v12 }
  0x17   :  { %1529 = vmatpush3.bf16.msra.mxu1 %v2112_v12 }
  0x18   :  { %1561 = vmatpush3.bf16.msra.mxu0 %v2112_v12  ;;  %1530 = vmatprep.subr.bf16.mxu1 %v2121_v13 }
  0x19   :  { %1562 = vmatprep.subr.bf16.mxu0 %v2121_v13 }
  0x1a   :  { %1517 = vmatmul.mubr.msk.bf16.gmra.mrb[8].mxu0 %vm107_vm0, %v1717_v7 }
  0x1b   :  { %1520 = vmatprep.mubr.msk.bf16.mxu0 %vm107_vm0, %v1718_v8  ;;  %1531 = vmatpush3.bf16.msra.mxu1 %v2121_v13 }
  0x1c   :  { %1563 = vmatpush3.bf16.msra.mxu0 %v2121_v13  ;;  %1532 = vmatprep.subr.bf16.mxu1 %v2130_v14 }
  0x1d   :  { %1564 = vmatprep.subr.bf16.mxu0 %v2130_v14 }
  0x1f   :  { %1533 = vmatpush3.bf16.msra.mxu1 %v2130_v14 }
  0x20   :  { %1565 = vmatpush3.bf16.msra.mxu0 %v2130_v14  ;;  %1534 = vmatprep.subr.bf16.mxu1 %v2139_v15 }
  0x21   :  { %1566 = vmatprep.subr.bf16.mxu0 %v2139_v15 }
  0x22   :  { %1521 = vmatmul.mubr.msk.bf16.gmra.mrb[12].mxu0 %vm107_vm0, %v1719_v9 }
  0x23   :  { %1535 = vmatpush3.bf16.msra.mxu1 %v2139_v15 }
  0x24   :  { %1567 = vmatpush3.bf16.msra.mxu0 %v2139_v15  ;;  %1536 = vmatprep.subr.bf16.mxu1 %v2148_v16 }
  0x25   :  { %1568 = vmatprep.subr.bf16.mxu0 %v2148_v16 }
  0x27   :  { %1537 = vmatpush3.bf16.msra.mxu1 %v2148_v16 }
  0x28   :  { %1569 = vmatpush3.bf16.msra.mxu0 %v2148_v16  ;;  %1538 = vmatprep.subr.bf16.mxu1 %v2157_v17 }
  0x29   :  { %1570 = vmatprep.subr.bf16.mxu0 %v2157_v17 }
  0x2b   :  { %1539 = vmatpush3.bf16.msra.mxu1 %v2157_v17 }
  0x2c   :  { %1571 = vmatpush3.bf16.msra.mxu0 %v2157_v17  ;;  %1588 = vmatprep.subr.bf16.mxu1 %v2094_v10 }
  0xdd   :  { %v1510_v19 = vpop.f32.mrb[0].mxu0 }
  0xde   :  { %v2170_v20 = vadd.f32 %v1510_v19, %v2167_v18  ;;  %v166_v21 = vpop.f32.mrb[1].mxu0 }
  0xdf   :  { %v2173_v22 = vadd.f32 %v2167_v18, %v166_v21  ;;  %v1511_v23 = vpop.f32.mrb[2].mxu0 }
  0xe0   :  { %v231_v24 = vsub.f32 0.0, %v2170_v20  ;;  %v2177_v25 = vadd.f32 %v1511_v23, %v2167_v18  ;;  %v169_v26 = vpop.f32.mrb[3].mxu0 }
  0xe1   :  { %v229_v27 = vsub.f32 0.0, %v2173_v22  ;;  %v2181_v28 = vadd.f32 %v2167_v18, %v169_v26 }
  0xe2   :  { %v249_v29 = vmul.f32 1.442695, %v231_v24  ;;  %v232_v30 = vsub.f32 0.0, %v2177_v25 }
  0xe3   :  { %v245_v31 = vmul.f32 1.442695, %v229_v27  ;;  %v230_v32 = vsub.f32 0.0, %v2181_v28 }
  0xe4   :  { %1728 = vpow2.f32 %v249_v29  ;;  %v251_v33 = vmul.f32 1.442695, %v232_v30 }
  0xe5   :  { %1730 = vpow2.f32 %v245_v31  ;;  %v247_v34 = vmul.f32 1.442695, %v230_v32  ;;  %v1514_v35 = vpop.f32.mrb[4].mxu0 }
  0xe6   :  { %1732 = vpow2.f32 %v251_v33  ;;  %v2186_v36 = vadd.f32 %v1514_v35, %v2167_v18  ;;  %v182_v37 = vpop.f32.mrb[5].mxu0 }
  0xe7   :  { %1734 = vpow2.f32 %v247_v34  ;;  %v2189_v38 = vadd.f32 %v2167_v18, %v182_v37  ;;  %v1515_v39 = vpop.f32.mrb[6].mxu0 }
  0xe8   :  { %v235_v40 = vsub.f32 0.0, %v2186_v36  ;;  %v2193_v41 = vadd.f32 %v1515_v39, %v2167_v18  ;;  %v185_v42 = vpop.f32.mrb[7].mxu0 }
  0xe9   :  { %v233_v43 = vsub.f32 0.0, %v2189_v38  ;;  %v2197_v44 = vadd.f32 %v2167_v18, %v185_v42 }
  0xea   :  { %v257_v45 = vmul.f32 1.442695, %v235_v40  ;;  %v236_v46 = vsub.f32 0.0, %v2193_v41 }
  0xeb   :  { %v253_v47 = vmul.f32 1.442695, %v233_v43  ;;  %v234_v48 = vsub.f32 0.0, %v2197_v44 }
  0xec   :  { %1736 = vpow2.f32 %v257_v45  ;;  %v259_v49 = vmul.f32 1.442695, %v236_v46 }
  0xed   :  { %1738 = vpow2.f32 %v253_v47  ;;  %v255_v50 = vmul.f32 1.442695, %v234_v48  ;;  %v1518_v51 = vpop.f32.mrb[8].mxu0 }
  0xee   :  { %v1729_v52 = vpop.eup %1728  ;;  %1740 = vpow2.f32 %v259_v49  ;;  %v2202_v53 = vadd.f32 %v1518_v51, %v2167_v18  ;;  %v198_v54 = vpop.f32.mrb[9].mxu0 }
  0xef   :  { %v1731_v55 = vpop.eup %1730  ;;  %v279_v56 = vadd.f32 1.0, %v1729_v52  ;;  %1742 = vpow2.f32 %v255_v50  ;;  %v2205_v57 = vadd.f32 %v2167_v18, %v198_v54  ;;  %v1519_v58 = vpop.f32.mrb[10].mxu0 }
  0xf0   :  { %v1733_v59 = vpop.eup %1732  ;;  %v277_v60 = vadd.f32 1.0, %v1731_v55  ;;  %v239_v61 = vsub.f32 0.0, %v2202_v53  ;;  %v2209_v62 = vadd.f32 %v1519_v58, %v2167_v18  ;;  %v201_v63 = vpop.f32.mrb[11].mxu0 }
  0xf1   :  { %v1735_v0 = vpop.eup %1734  ;;  %1744 = vrcp.f32 %v279_v56  ;;  %v280_v1 = vadd.f32 1.0, %v1733_v59  ;;  %v237_v2 = vsub.f32 0.0, %v2205_v57  ;;  %v2213_v3 = vadd.f32 %v2167_v18, %v201_v63 }
  0xf2   :  { %1746 = vrcp.f32 %v277_v60  ;;  %v278_v4 = vadd.f32 1.0, %v1735_v0  ;;  %v265_v5 = vmul.f32 1.442695, %v239_v61  ;;  %v240_v6 = vsub.f32 0.0, %v2209_v62 }
  0xf3   :  { %1748 = vrcp.f32 %v280_v1  ;;  %v261_v7 = vmul.f32 1.442695, %v237_v2  ;;  %v238_v8 = vsub.f32 0.0, %v2213_v3 }
  0xf4   :  { %1750 = vrcp.f32 %v278_v4  ;;  %v267_v9 = vmul.f32 1.442695, %v240_v6 }
  0xf5   :  { %1752 = vpow2.f32 %v265_v5  ;;  %v263_v19 = vmul.f32 1.442695, %v238_v8  ;;  %v1522_v21 = vpop.f32.mrb[12].mxu0 }
  0xf6   :  { %v1737_v23 = vpop.eup %1736  ;;  %1754 = vpow2.f32 %v261_v7  ;;  %v2218_v24 = vadd.f32 %v1522_v21, %v2167_v18  ;;  %v214_v26 = vpop.f32.mrb[13].mxu0 }
  0xf7   :  { %v1739_v27 = vpop.eup %1738  ;;  %v283_v29 = vadd.f32 1.0, %v1737_v23  ;;  %1756 = vpow2.f32 %v267_v9  ;;  %v2221_v30 = vadd.f32 %v2167_v18, %v214_v26  ;;  %v1523_v31 = vpop.f32.mrb[14].mxu0 }
  0xf8   :  { %v1741_v32 = vpop.eup %1740  ;;  %v281_v33 = vadd.f32 1.0, %v1739_v27  ;;  %1758 = vpow2.f32 %v263_v19  ;;  %v243_v34 = vsub.f32 0.0, %v2218_v24  ;;  %v2225_v35 = vadd.f32 %v1523_v31, %v2167_v18  ;;  %v217_v37 = vpop.f32.mrb[15].mxu0 }
  0xf9   :  { %v1743_v39 = vpop.eup %1742  ;;  %1760 = vrcp.f32 %v283_v29  ;;  %v284_v40 = vadd.f32 1.0, %v1741_v32  ;;  %v241_v42 = vsub.f32 0.0, %v2221_v30  ;;  %v2229_v43 = vadd.f32 %v2167_v18, %v217_v37 }
  0xfa   :  { %1762 = vrcp.f32 %v281_v33  ;;  %v282_v45 = vadd.f32 1.0, %v1743_v39  ;;  %v273_v46 = vmul.f32 1.442695, %v243_v34  ;;  %v244_v47 = vsub.f32 0.0, %v2225_v35 }
  0xfb   :  { %v1745_v48 = vpop.eup %1744  ;;  %1764 = vrcp.f32 %v284_v40  ;;  %v269_v49 = vmul.f32 1.442695, %v241_v42  ;;  %v242_v50 = vsub.f32 0.0, %v2229_v43 }
  0xfc   :  { %v1747_v51 = vpop.eup %1746  ;;  %1766 = vrcp.f32 %v282_v45  ;;  %v275_v52 = vmul.f32 1.442695, %v244_v47  ;;  %v311_v18 = vmul.f32 %v1745_v48, %v2170_v20 }
  0xfd   :  { %v1749_v54 = vpop.eup %1748  ;;  %1768 = vpow2.f32 %v273_v46  ;;  %v271_v55 = vmul.f32 1.442695, %v242_v50  ;;  %v309_v60 = vmul.f32 %v1747_v51, %v2173_v22 }
  0xfe   :  { %v1751_v56 = vpop.eup %1750  ;;  %v312_v58 = vmul.f32 %v1749_v54, %v2177_v25  ;;  %1770 = vpow2.f32 %v269_v49 }
  0xff   :  { %v1753_v59 = vpop.eup %1752  ;;  %1772 = vpow2.f32 %v275_v52  ;;  %v310_v61 = vmul.f32 %v1751_v56, %v2181_v28 }
 0x100   :  { %v1755_v63 = vpop.eup %1754  ;;  %v287_v0 = vadd.f32 1.0, %v1753_v59  ;;  %1774 = vpow2.f32 %v271_v55  ;;  %v326_v1 = vpack.c.bf16 %v312_v58, %v311_v18 }
 0x101   :  { %v1757_v2 = vpop.eup %1756  ;;  %v285_v4 = vadd.f32 1.0, %v1755_v63  ;;  %v325_v5 = vpack.c.bf16 %v310_v61, %v309_v60 }
 0x102   :  { %v1759_v6 = vpop.eup %1758  ;;  %1776 = vrcp.f32 %v287_v0  ;;  %v288_v7 = vadd.f32 1.0, %v1757_v2 }
 0x103   :  { %v1761_v20 = vpop.eup %1760  ;;  %1778 = vrcp.f32 %v285_v4  ;;  %v286_v25 = vadd.f32 1.0, %v1759_v6  ;;  %1540 = vmatprep.mubr.bf16.mxu1 %v325_v5 }
 0x104   :  { %v1763_v8 = vpop.eup %1762  ;;  %1780 = vrcp.f32 %v288_v7  ;;  %1541 = vmatmul.mubr.bf16.vlgmr.msra.gmra.mrb[0].mxu1 %v326_v1  ;;  %v315_v9 = vmul.f32 %v1761_v20, %v2186_v36 }
 0x105   :  { %v1765_v22 = vpop.eup %1764  ;;  %1782 = vrcp.f32 %v286_v25  ;;  %1589 = vmatpush3.bf16.msra.mxu1 %v2094_v10  ;;  %v313_v23 = vmul.f32 %v1763_v8, %v2189_v38 }
 0x106   :  { %v1767_v28 = vpop.eup %1766  ;;  %v316_v19 = vmul.f32 %v1765_v22, %v2193_v41  ;;  %1590 = vmatprep.subr.bf16.mxu1 %v2103_v11 }
 0x107   :  { %v1769_v21 = vpop.eup %1768  ;;  %v314_v26 = vmul.f32 %v1767_v28, %v2197_v44 }
 0x108   :  { %v1771_v27 = vpop.eup %1770  ;;  %v291_v29 = vadd.f32 1.0, %v1769_v21  ;;  %v328_v31 = vpack.c.bf16 %v316_v19, %v315_v9 }
 0x109   :  { %v1773_v32 = vpop.eup %1772  ;;  %v289_v33 = vadd.f32 1.0, %v1771_v27  ;;  %v327_v34 = vpack.c.bf16 %v314_v26, %v313_v23  ;;  %1591 = vmatpush3.bf16.msra.mxu1 %v2103_v11 }
 0x10a   :  { %v1775_v10 = vpop.eup %1774  ;;  %1784 = vrcp.f32 %v291_v29  ;;  %v292_v36 = vadd.f32 1.0, %v1773_v32  ;;  %1592 = vmatprep.subr.bf16.mxu1 %v2112_v12 }
 0x10b   :  { %1786 = vrcp.f32 %v289_v33  ;;  %v290_v41 = vadd.f32 1.0, %v1775_v10  ;;  %1544 = vmatprep.mubr.bf16.mxu1 %v327_v34 }
 0x10c   :  { %v1777_v37 = vpop.eup %1776  ;;  %1788 = vrcp.f32 %v292_v36  ;;  %1545 = vmatmul.mubr.bf16.gmra.mrb[4].mxu1 %v328_v31 }
 0x10d   :  { %v1779_v38 = vpop.eup %1778  ;;  %1790 = vrcp.f32 %v290_v41  ;;  %1593 = vmatpush3.bf16.msra.mxu1 %v2112_v12  ;;  %v319_v11 = vmul.f32 %v1777_v37, %v2202_v53 }
 0x10e   :  { %v1781_v44 = vpop.eup %1780  ;;  %1594 = vmatprep.subr.bf16.mxu1 %v2121_v13  ;;  %v317_v42 = vmul.f32 %v1779_v38, %v2205_v57 }
 0x10f   :  { %v1783_v39 = vpop.eup %1782  ;;  %v320_v40 = vmul.f32 %v1781_v44, %v2209_v62 }
 0x110   :  { %v318_v45 = vmul.f32 %v1783_v39, %v2213_v3 }
 0x111   :  { %v330_v46 = vpack.c.bf16 %v320_v40, %v319_v11  ;;  %1595 = vmatpush3.bf16.msra.mxu1 %v2121_v13 }
 0x112   :  { %v329_v47 = vpack.c.bf16 %v318_v45, %v317_v42  ;;  %1596 = vmatprep.subr.bf16.mxu1 %v2130_v14 }
 0x114   :  { %v1785_v48 = vpop.eup %1784  ;;  %1548 = vmatprep.mubr.bf16.mxu1 %v329_v47 }
 0x115   :  { %v1787_v12 = vpop.eup %1786  ;;  %1549 = vmatmul.mubr.bf16.gmra.mrb[8].mxu1 %v330_v46  ;;  %v323_v62 = vmul.f32 %v1785_v48, %v2218_v24 }
 0x116   :  { %v1789_v49 = vpop.eup %1788  ;;  %1597 = vmatpush3.bf16.msra.mxu1 %v2130_v14  ;;  %v321_v3 = vmul.f32 %v1787_v12, %v2221_v30  ;;  %v2267_v14 = vld [vmem:[%s2649_s5] ss:$0 sm:$0xff] }
 0x117   :  { %v1791_v53 = vpop.eup %1790  ;;  %v324_v57 = vmul.f32 %v1789_v49, %v2225_v35  ;;  %1598 = vmatprep.subr.bf16.mxu1 %v2139_v15 }
 0x118   :  { %v322_v13 = vmul.f32 %v1791_v53, %v2229_v43 }
 0x119   :  { %v332_v50 = vpack.c.bf16 %v324_v57, %v323_v62 }
 0x11a   :  { %v331_v51 = vpack.c.bf16 %v322_v13, %v321_v3  ;;  %1599 = vmatpush3.bf16.msra.mxu1 %v2139_v15 }
 0x11b   :  { %1600 = vmatprep.subr.bf16.mxu1 %v2148_v16 }
 0x11c   :  { %1552 = vmatprep.mubr.bf16.mxu1 %v331_v51 }
 0x11d   :  { %1553 = vmatmul.mubr.bf16.gmra.mrb[12].mxu1 %v332_v50 }
 0x11e   :  { %1601 = vmatpush3.bf16.msra.mxu1 %v2148_v16 }
 0x11f   :  { %1602 = vmatprep.subr.bf16.mxu1 %v2157_v17 }
 0x122   :  { %1603 = vmatpush3.bf16.msra.mxu1 %v2157_v17 }
 0x1d7   :  { %v1542_v24 = vpop.f32.mrb[0].mxu1 }
 0x1d8   :  { %v2270_v30 = vadd.f32 %v1542_v24, %v2267_v14  ;;  %v438_v15 = vpop.f32.mrb[1].mxu1 }
 0x1d9   :  { %v2273_v35 = vadd.f32 %v2267_v14, %v438_v15  ;;  %v1543_v43 = vpop.f32.mrb[2].mxu1 }
 0x1da   :  { %v503_v16 = vsub.f32 0.0, %v2270_v30  ;;  %v2277_v52 = vadd.f32 %v1543_v43, %v2267_v14  ;;  %v441_v17 = vpop.f32.mrb[3].mxu1 }
 0x1db   :  { %v501_v54 = vsub.f32 0.0, %v2273_v35  ;;  %v2281_v55 = vadd.f32 %v2267_v14, %v441_v17 }
 0x1dc   :  { %v521_v56 = vmul.f32 1.442695, %v503_v16  ;;  %v504_v18 = vsub.f32 0.0, %v2277_v52 }
 0x1dd   :  { %v517_v58 = vmul.f32 1.442695, %v501_v54  ;;  %v502_v59 = vsub.f32 0.0, %v2281_v55 }
 0x1de   :  { %1792 = vpow2.f32 %v521_v56  ;;  %v523_v60 = vmul.f32 1.442695, %v504_v18 }
 0x1df   :  { %1794 = vpow2.f32 %v517_v58  ;;  %v519_v61 = vmul.f32 1.442695, %v502_v59  ;;  %v1546_v63 = vpop.f32.mrb[4].mxu1 }
 0x1e0   :  { %1796 = vpow2.f32 %v523_v60  ;;  %v2286_v0 = vadd.f32 %v1546_v63, %v2267_v14  ;;  %v454_v1 = vpop.f32.mrb[5].mxu1 }
 0x1e1   :  { %1798 = vpow2.f32 %v519_v61  ;;  %v2289_v2 = vadd.f32 %v2267_v14, %v454_v1  ;;  %v1547_v4 = vpop.f32.mrb[6].mxu1 }
 0x1e2   :  { %v507_v5 = vsub.f32 0.0, %v2286_v0  ;;  %v2293_v6 = vadd.f32 %v1547_v4, %v2267_v14  ;;  %v457_v7 = vpop.f32.mrb[7].mxu1 }
 0x1e3   :  { %v505_v20 = vsub.f32 0.0, %v2289_v2  ;;  %v2297_v25 = vadd.f32 %v2267_v14, %v457_v7 }
 0x1e4   :  { %v529_v8 = vmul.f32 1.442695, %v507_v5  ;;  %v508_v22 = vsub.f32 0.0, %v2293_v6 }
 0x1e5   :  { %v525_v28 = vmul.f32 1.442695, %v505_v20  ;;  %v506_v9 = vsub.f32 0.0, %v2297_v25 }
 0x1e6   :  { %1800 = vpow2.f32 %v529_v8  ;;  %v531_v19 = vmul.f32 1.442695, %v508_v22 }
 0x1e7   :  { %1802 = vpow2.f32 %v525_v28  ;;  %v527_v21 = vmul.f32 1.442695, %v506_v9 }
 0x1e8   :  { %v1793_v23 = vpop.eup %1792  ;;  %1804 = vpow2.f32 %v531_v19  ;;  %v1550_v26 = vpop.f32.mrb[8].mxu1 }
 0x1e9   :  { %v1795_v27 = vpop.eup %1794  ;;  %v551_v29 = vadd.f32 1.0, %v1793_v23  ;;  %1806 = vpow2.f32 %v527_v21  ;;  %v2302_v31 = vadd.f32 %v1550_v26, %v2267_v14  ;;  %v470_v32 = vpop.f32.mrb[9].mxu1 }
 0x1ea   :  { %v1797_v33 = vpop.eup %1796  ;;  %v549_v34 = vadd.f32 1.0, %v1795_v27  ;;  %v2305_v10 = vadd.f32 %v2267_v14, %v470_v32  ;;  %v1551_v36 = vpop.f32.mrb[10].mxu1 }
 0x1eb   :  { %v1799_v41 = vpop.eup %1798  ;;  %1808 = vrcp.f32 %v551_v29  ;;  %v552_v37 = vadd.f32 1.0, %v1797_v33  ;;  %v511_v38 = vsub.f32 0.0, %v2302_v31  ;;  %v2309_v44 = vadd.f32 %v1551_v36, %v2267_v14  ;;  %v473_v39 = vpop.f32.mrb[11].mxu1 }
 0x1ec   :  { %1810 = vrcp.f32 %v549_v34  ;;  %v550_v11 = vadd.f32 1.0, %v1799_v41  ;;  %v509_v40 = vsub.f32 0.0, %v2305_v10  ;;  %v2313_v42 = vadd.f32 %v2267_v14, %v473_v39 }
 0x1ed   :  { %1812 = vrcp.f32 %v552_v37  ;;  %v537_v45 = vmul.f32 1.442695, %v511_v38  ;;  %v512_v46 = vsub.f32 0.0, %v2309_v44 }
 0x1ee   :  { %1814 = vrcp.f32 %v550_v11  ;;  %v533_v47 = vmul.f32 1.442695, %v509_v40  ;;  %v510_v48 = vsub.f32 0.0, %v2313_v42 }
 0x1ef   :  { %1816 = vpow2.f32 %v537_v45  ;;  %v539_v12 = vmul.f32 1.442695, %v512_v46 }
 0x1f0   :  { %v1801_v49 = vpop.eup %1800  ;;  %1818 = vpow2.f32 %v533_v47  ;;  %v535_v53 = vmul.f32 1.442695, %v510_v48  ;;  %v1554_v62 = vpop.f32.mrb[12].mxu1 }
 0x1f1   :  { %v1803_v57 = vpop.eup %1802  ;;  %v555_v3 = vadd.f32 1.0, %v1801_v49  ;;  %1820 = vpow2.f32 %v539_v12  ;;  %v2318_v13 = vadd.f32 %v1554_v62, %v2267_v14  ;;  %v486_v50 = vpop.f32.mrb[13].mxu1 }
 0x1f2   :  { %v1805_v51 = vpop.eup %1804  ;;  %v553_v24 = vadd.f32 1.0, %v1803_v57  ;;  %1822 = vpow2.f32 %v535_v53  ;;  %v2321_v15 = vadd.f32 %v2267_v14, %v486_v50  ;;  %v1555_v43 = vpop.f32.mrb[14].mxu1 }
 0x1f3   :  { %v1807_v16 = vpop.eup %1806  ;;  %1824 = vrcp.f32 %v555_v3  ;;  %v556_v17 = vadd.f32 1.0, %v1805_v51  ;;  %v515_v54 = vsub.f32 0.0, %v2318_v13  ;;  %v2325_v56 = vadd.f32 %v1555_v43, %v2267_v14  ;;  %v489_v18 = vpop.f32.mrb[15].mxu1 }
 0x1f4   :  { %1826 = vrcp.f32 %v553_v24  ;;  %v554_v58 = vadd.f32 1.0, %v1807_v16  ;;  %v513_v59 = vsub.f32 0.0, %v2321_v15  ;;  %v2329_v60 = vadd.f32 %v2267_v14, %v489_v18 }
 0x1f5   :  { %v1809_v61 = vpop.eup %1808  ;;  %1828 = vrcp.f32 %v556_v17  ;;  %v545_v63 = vmul.f32 1.442695, %v515_v54  ;;  %v516_v1 = vsub.f32 0.0, %v2325_v56 }
 0x1f6   :  { %v1811_v4 = vpop.eup %1810  ;;  %1830 = vrcp.f32 %v554_v58  ;;  %v541_v5 = vmul.f32 1.442695, %v513_v59  ;;  %v514_v7 = vsub.f32 0.0, %v2329_v60  ;;  %v583_v28 = vmul.f32 %v1809_v61, %v2270_v30 }
 0x1f7   :  { %v1813_v20 = vpop.eup %1812  ;;  %1832 = vpow2.f32 %v545_v63  ;;  %v547_v8 = vmul.f32 1.442695, %v516_v1  ;;  %v581_v23 = vmul.f32 %v1811_v4, %v2273_v35 }
 0x1f8   :  { %v1815_v22 = vpop.eup %1814  ;;  %v584_v9 = vmul.f32 %v1813_v20, %v2277_v52  ;;  %1834 = vpow2.f32 %v541_v5  ;;  %v543_v19 = vmul.f32 1.442695, %v514_v7  ;;  %v1003_v5 = vld [vmem:[%s2645_s1 + $0x20] sm:$0xff]  ;;  %v1004_v7 = vld [vmem:[%s2645_s1 + $0x28] sm:$0xff]  ;;  %v1005_v20 = vld [vmem:[%s2645_s1 + $0x30] sm:$0xff] }
 0x1f9   :  { %v1817_v21 = vpop.eup %1816  ;;  %v582_v26 = vmul.f32 %v1815_v22, %v2281_v55  ;;  %1836 = vpow2.f32 %v547_v8  ;;  %v1006_v8 = vld [vmem:[%s2645_s1 + $0x38] sm:$0xff]  ;;  %v1007_v22 = vld [vmem:[%s2645_s1 + $0x40] sm:$0xff] }
 0x1fa   :  { %v1819_v27 = vpop.eup %1818  ;;  %v598_v29 = vpack.c.bf16 %v584_v9, %v583_v28  ;;  %v559_v32 = vadd.f32 1.0, %v1817_v21  ;;  %1838 = vpow2.f32 %v543_v19  ;;  %v1008_v28 = vld [vmem:[%s2645_s1 + $0x48] sm:$0xff]  ;;  %v1009_v9 = vld [vmem:[%s2645_s1 + $0x50] sm:$0xff]  ;;  %v1010_v19 = vld [vmem:[%s2645_s1 + $0x58] sm:$0xff] }
 0x1fb   :  { %v1821_v33 = vpop.eup %1820  ;;  %v557_v34 = vadd.f32 1.0, %v1819_v27  ;;  %v597_v36 = vpack.c.bf16 %v582_v26, %v581_v23  ;;  %v1011_v21 = vld [vmem:[%s2645_s1 + $0x60] sm:$0xff]  ;;  %v1012_v23 = vld [vmem:[%s2645_s1 + $0x68] sm:$0xff]  ;;  %v1013_v26 = vld [vmem:[%s2645_s1 + $0x70] sm:$0xff] }
 0x1fc   :  { %v1823_v41 = vpop.eup %1822  ;;  %1840 = vrcp.f32 %v559_v32  ;;  %v560_v30 = vadd.f32 1.0, %v1821_v33  ;;  %v1014_v27 = vld [vmem:[%s2645_s1 + $0x78] sm:$0xff] }
 0x1fd   :  { %v1825_v37 = vpop.eup %1824  ;;  %1842 = vrcp.f32 %v557_v34  ;;  %v558_v52 = vadd.f32 1.0, %v1823_v41  ;;  %1572 = vmatprep.mubr.bf16.mxu0 %v597_v36 }
 0x1fe   :  { %v1827_v38 = vpop.eup %1826  ;;  %1844 = vrcp.f32 %v560_v30  ;;  %1573 = vmatmul.mubr.bf16.vlgmr.msra.gmra.mrb[16].mxu0 %v598_v29  ;;  %v587_v39 = vmul.f32 %v1825_v37, %v2286_v0 }
 0x1ff   :  { %v1829_v35 = vpop.eup %1828  ;;  %1846 = vrcp.f32 %v558_v52  ;;  %v585_v45 = vmul.f32 %v1827_v38, %v2289_v2 }
 0x200   :  { %v1831_v55 = vpop.eup %1830  ;;  %v588_v11 = vmul.f32 %v1829_v35, %v2293_v6 }
 0x201   :  { %v1833_v40 = vpop.eup %1832  ;;  %v586_v46 = vmul.f32 %v1831_v55, %v2297_v25 }
 0x202   :  { %v1835_v47 = vpop.eup %1834  ;;  %v563_v48 = vadd.f32 1.0, %v1833_v40  ;;  %v600_v12 = vpack.c.bf16 %v588_v11, %v587_v39 }
 0x203   :  { %v1837_v49 = vpop.eup %1836  ;;  %v561_v53 = vadd.f32 1.0, %v1835_v47  ;;  %v599_v62 = vpack.c.bf16 %v586_v46, %v585_v45 }
 0x204   :  { %v1839_v57 = vpop.eup %1838  ;;  %1848 = vrcp.f32 %v563_v48  ;;  %v564_v3 = vadd.f32 1.0, %v1837_v49 }
 0x205   :  { %1850 = vrcp.f32 %v561_v53  ;;  %v562_v50 = vadd.f32 1.0, %v1839_v57  ;;  %1576 = vmatprep.mubr.bf16.mxu0 %v599_v62 }
 0x206   :  { %v1841_v0 = vpop.eup %1840  ;;  %1852 = vrcp.f32 %v564_v3  ;;  %1577 = vmatmul.mubr.bf16.gmra.mrb[20].mxu0 %v600_v12 }
 0x207   :  { %v1843_v6 = vpop.eup %1842  ;;  %1854 = vrcp.f32 %v562_v50  ;;  %v591_v25 = vmul.f32 %v1841_v0, %v2302_v31 }
 0x208   :  { %v1845_v2 = vpop.eup %1844  ;;  %v589_v43 = vmul.f32 %v1843_v6, %v2305_v10 }
 0x209   :  { %v1847_v51 = vpop.eup %1846  ;;  %v592_v24 = vmul.f32 %v1845_v2, %v2309_v44 }
 0x20a   :  { %v590_v16 = vmul.f32 %v1847_v51, %v2313_v42  ;;  %v1015_v42 = vld [vmem:[%s2650_s6] sm:$0xff] }
 0x20b   :  { %v602_v17 = vpack.c.bf16 %v592_v24, %v591_v25  ;;  %1620 = vmatprep.subr.mxu0 %v1015_v42 }
 0x20c   :  { %v601_v54 = vpack.c.bf16 %v590_v16, %v589_v43  ;;  %1621 = vmatpush3.msra.mxu0 %v1015_v42 }
 0x20e   :  { %v1849_v18 = vpop.eup %1848  ;;  %1580 = vmatprep.mubr.bf16.mxu0 %v601_v54 }
 0x20f   :  { %v1851_v58 = vpop.eup %1850  ;;  %1581 = vmatmul.mubr.bf16.gmra.mrb[24].mxu0 %v602_v17  ;;  %v595_v63 = vmul.f32 %v1849_v18, %v2318_v13  ;;  %v999_v13 = vld [vmem:[%s2645_s1] sm:$0xff] }
 0x210   :  { %v1853_v59 = vpop.eup %1852  ;;  %v593_v31 = vmul.f32 %v1851_v58, %v2321_v15  ;;  %v1000_v15 = vld [vmem:[%s2645_s1 + $0x8] sm:$0xff] }
 0x211   :  { %v1855_v61 = vpop.eup %1854  ;;  %v596_v1 = vmul.f32 %v1853_v59, %v2325_v56  ;;  %v1001_v56 = vld [vmem:[%s2645_s1 + $0x10] sm:$0xff] }
 0x212   :  { %v594_v44 = vmul.f32 %v1855_v61, %v2329_v60  ;;  %v1002_v60 = vld [vmem:[%s2645_s1 + $0x18] sm:$0xff]  ;;  %s2012_s1 = smov [#allocation2]  }
 0x213   :  { %v604_v4 = vpack.c.bf16 %v596_v1, %v595_v63  ;;  %s1358_s17 = sshll.u32 %s2012_s1, 4  ;;  %s1359_s17 = int_to_ptr.vmem [resolvable:$true] %s1358_s17 }
 0x214   :  { %v603_v10 = vpack.c.bf16 %v594_v44, %v593_v31  ;;  %s1984_s18 = scalar_lea.vmem %s1359_s17, 16  ;;  %s1988_s19 = scalar_lea.vmem %s1359_s17, 32 }
 0x215   :  { %p1985_p0 = scmp.ne.s32.totalorder %s1359_s17, %s1984_s18  ;;  %p1989_p1 = scmp.lt.s32.totalorder %s1359_s17, %s1359_s17 }
 0x216   :  { %1584 = vmatprep.mubr.bf16.mxu0 %v603_v10  ;;  %p1990_p2 = scmp.lt.s32.totalorder %s1988_s19, %s1984_s18 }
 0x217   :  { %1585 = vmatmul.mubr.bf16.gmra.mrb[28].mxu0 %v604_v4 }
 0x218   :  { %1622 = vmatprep.mubr.msk.f32.mxu0 %vm1016_vm1, %v999_v13  ;;  %p1991_p3 = por %p1990_p2, %p1989_p1 }
 0x21a   :  { %p1992_p4 = pnand %p1991_p3, %p1985_p0 }
 0x21f   :  { %1623 = vmatmul.mubr.msk.f32.vlgmr.msra.gmra.mrb[32].mxu0 %vm1016_vm1, %v1000_v15 }
 0x220   :  { %1625 = vmatprep.mubr.msk.f32.mxu0 %vm1016_vm1, %v1001_v56 }
 0x223   :  { %1626 = vmatmul.mubr.msk.f32.gmra.mrb[34].mxu0 %vm1016_vm1, %v1002_v60 }
 0x224   :  { %1628 = vmatprep.mubr.msk.f32.mxu0 %vm1016_vm1, %v1003_v5 }
 0x227   :  { %1629 = vmatmul.mubr.msk.f32.gmra.mrb[36].mxu0 %vm1016_vm1, %v1004_v7 }
 0x228   :  { %1631 = vmatprep.mubr.msk.f32.mxu0 %vm1016_vm1, %v1005_v20 }
 0x22b   :  { %1632 = vmatmul.mubr.msk.f32.gmra.mrb[38].mxu0 %vm1016_vm1, %v1006_v8 }
 0x22c   :  { %1634 = vmatprep.mubr.msk.f32.mxu0 %vm1016_vm1, %v1007_v22 }
 0x22f   :  { %1635 = vmatmul.mubr.msk.f32.gmra.mrb[40].mxu0 %vm1016_vm1, %v1008_v28 }
 0x230   :  { %1637 = vmatprep.mubr.msk.f32.mxu0 %vm1016_vm1, %v1009_v9 }
 0x233   :  { %1638 = vmatmul.mubr.msk.f32.gmra.mrb[42].mxu0 %vm1016_vm1, %v1010_v19 }
 0x234   :  { %1640 = vmatprep.mubr.msk.f32.mxu0 %vm1016_vm1, %v1011_v21 }
 0x237   :  { %1641 = vmatmul.mubr.msk.f32.gmra.mrb[44].mxu0 %vm1016_vm1, %v1012_v23 }
 0x238   :  { %1643 = vmatprep.mubr.msk.f32.mxu0 %vm1016_vm1, %v1013_v26 }
 0x23b   :  { %1644 = vmatmul.mubr.msk.f32.gmra.mrb[46].mxu0 %vm1016_vm1, %v1014_v27 }
 0x2d1   :  { %v1574_v29 = vpop.f32.mrb[16].mxu0 }
 0x2d2   :  { %v2417_v32 = vadd.f32 %v1574_v29, %v2267_v14  ;;  %v639_v33 = vpop.f32.mrb[17].mxu0 }
 0x2d3   :  { %v2420_v34 = vadd.f32 %v2267_v14, %v639_v33  ;;  %v1575_v36 = vpop.f32.mrb[18].mxu0 }
 0x2d4   :  { %v704_v41 = vsub.f32 0.0, %v2417_v32  ;;  %v2424_v30 = vadd.f32 %v1575_v36, %v2267_v14  ;;  %v642_v37 = vpop.f32.mrb[19].mxu0 }
 0x2d5   :  { %v702_v52 = vsub.f32 0.0, %v2420_v34  ;;  %v2428_v38 = vadd.f32 %v2267_v14, %v642_v37 }
 0x2d6   :  { %v722_v35 = vmul.f32 1.442695, %v704_v41  ;;  %v705_v55 = vsub.f32 0.0, %v2424_v30 }
 0x2d7   :  { %v718_v39 = vmul.f32 1.442695, %v702_v52  ;;  %v703_v11 = vsub.f32 0.0, %v2428_v38 }
 0x2d8   :  { %1856 = vpow2.f32 %v722_v35  ;;  %v724_v40 = vmul.f32 1.442695, %v705_v55 }
 0x2d9   :  { %1858 = vpow2.f32 %v718_v39  ;;  %v720_v45 = vmul.f32 1.442695, %v703_v11  ;;  %v1578_v46 = vpop.f32.mrb[20].mxu0 }
 0x2da   :  { %1860 = vpow2.f32 %v724_v40  ;;  %v2433_v47 = vadd.f32 %v1578_v46, %v2267_v14  ;;  %v655_v48 = vpop.f32.mrb[21].mxu0 }
 0x2db   :  { %1862 = vpow2.f32 %v720_v45  ;;  %v2436_v12 = vadd.f32 %v2267_v14, %v655_v48  ;;  %v1579_v49 = vpop.f32.mrb[22].mxu0 }
 0x2dc   :  { %v708_v53 = vsub.f32 0.0, %v2433_v47  ;;  %v2440_v62 = vadd.f32 %v1579_v49, %v2267_v14  ;;  %v658_v57 = vpop.f32.mrb[23].mxu0 }
 0x2dd   :  { %v706_v3 = vsub.f32 0.0, %v2436_v12  ;;  %v2444_v50 = vadd.f32 %v2267_v14, %v658_v57 }
 0x2de   :  { %v730_v0 = vmul.f32 1.442695, %v708_v53  ;;  %v709_v6 = vsub.f32 0.0, %v2440_v62 }
 0x2df   :  { %v726_v2 = vmul.f32 1.442695, %v706_v3  ;;  %v707_v51 = vsub.f32 0.0, %v2444_v50 }
 0x2e0   :  { %1864 = vpow2.f32 %v730_v0  ;;  %v732_v25 = vmul.f32 1.442695, %v709_v6 }
 0x2e1   :  { %1866 = vpow2.f32 %v726_v2  ;;  %v728_v24 = vmul.f32 1.442695, %v707_v51 }
 0x2e2   :  { %v1857_v43 = vpop.eup %1856  ;;  %1868 = vpow2.f32 %v732_v25  ;;  %v1582_v16 = vpop.f32.mrb[24].mxu0 }
 0x2e3   :  { %v1859_v17 = vpop.eup %1858  ;;  %v752_v54 = vadd.f32 1.0, %v1857_v43  ;;  %1870 = vpow2.f32 %v728_v24  ;;  %v2449_v18 = vadd.f32 %v1582_v16, %v2267_v14  ;;  %v671_v58 = vpop.f32.mrb[25].mxu0 }
 0x2e4   :  { %v1861_v59 = vpop.eup %1860  ;;  %v750_v61 = vadd.f32 1.0, %v1859_v17  ;;  %v2452_v63 = vadd.f32 %v2267_v14, %v671_v58  ;;  %v1583_v1 = vpop.f32.mrb[26].mxu0 }
 0x2e5   :  { %v1863_v31 = vpop.eup %1862  ;;  %1872 = vrcp.f32 %v752_v54  ;;  %v753_v44 = vadd.f32 1.0, %v1861_v59  ;;  %v712_v4 = vsub.f32 0.0, %v2449_v18  ;;  %v2456_v10 = vadd.f32 %v1583_v1, %v2267_v14  ;;  %v674_v42 = vpop.f32.mrb[27].mxu0 }
 0x2e6   :  { %1874 = vrcp.f32 %v750_v61  ;;  %v751_v13 = vadd.f32 1.0, %v1863_v31  ;;  %v710_v15 = vsub.f32 0.0, %v2452_v63  ;;  %v2460_v56 = vadd.f32 %v2267_v14, %v674_v42 }
 0x2e7   :  { %1876 = vrcp.f32 %v753_v44  ;;  %v738_v60 = vmul.f32 1.442695, %v712_v4  ;;  %v713_v5 = vsub.f32 0.0, %v2456_v10 }
 0x2e8   :  { %1878 = vrcp.f32 %v751_v13  ;;  %v734_v7 = vmul.f32 1.442695, %v710_v15  ;;  %v711_v20 = vsub.f32 0.0, %v2460_v56 }
 0x2e9   :  { %1880 = vpow2.f32 %v738_v60  ;;  %v740_v8 = vmul.f32 1.442695, %v713_v5 }
 0x2ea   :  { %v1865_v22 = vpop.eup %1864  ;;  %1882 = vpow2.f32 %v734_v7  ;;  %v736_v28 = vmul.f32 1.442695, %v711_v20  ;;  %v1586_v9 = vpop.f32.mrb[28].mxu0 }
 0x2eb   :  { %v1867_v19 = vpop.eup %1866  ;;  %v756_v21 = vadd.f32 1.0, %v1865_v22  ;;  %1884 = vpow2.f32 %v740_v8  ;;  %v2465_v23 = vadd.f32 %v1586_v9, %v2267_v14  ;;  %v687_v26 = vpop.f32.mrb[29].mxu0 }
 0x2ec   :  { %v1869_v27 = vpop.eup %1868  ;;  %v754_v29 = vadd.f32 1.0, %v1867_v19  ;;  %1886 = vpow2.f32 %v736_v28  ;;  %v2468_v33 = vadd.f32 %v2267_v14, %v687_v26  ;;  %v1587_v36 = vpop.f32.mrb[30].mxu0 }
 0x2ed   :  { %v1871_v41 = vpop.eup %1870  ;;  %1888 = vrcp.f32 %v756_v21  ;;  %v757_v37 = vadd.f32 1.0, %v1869_v27  ;;  %v716_v52 = vsub.f32 0.0, %v2465_v23  ;;  %v2472_v35 = vadd.f32 %v1587_v36, %v2267_v14  ;;  %v690_v55 = vpop.f32.mrb[31].mxu0 }
 0x2ee   :  { %1890 = vrcp.f32 %v754_v29  ;;  %v755_v39 = vadd.f32 1.0, %v1871_v41  ;;  %v714_v11 = vsub.f32 0.0, %v2468_v33  ;;  %v2476_v40 = vadd.f32 %v2267_v14, %v690_v55 }
 0x2ef   :  { %v1873_v45 = vpop.eup %1872  ;;  %1892 = vrcp.f32 %v757_v37  ;;  %v746_v46 = vmul.f32 1.442695, %v716_v52  ;;  %v717_v48 = vsub.f32 0.0, %v2472_v35 }
 0x2f0   :  { %v1875_v49 = vpop.eup %1874  ;;  %1894 = vrcp.f32 %v755_v39  ;;  %v742_v53 = vmul.f32 1.442695, %v714_v11  ;;  %v715_v57 = vsub.f32 0.0, %v2476_v40  ;;  %v784_v2 = vmul.f32 %v1873_v45, %v2417_v32 }
 0x2f1   :  { %v1877_v3 = vpop.eup %1876  ;;  %1896 = vpow2.f32 %v746_v46  ;;  %v748_v0 = vmul.f32 1.442695, %v717_v48  ;;  %v782_v43 = vmul.f32 %v1875_v49, %v2420_v34 }
 0x2f2   :  { %v1879_v6 = vpop.eup %1878  ;;  %v785_v51 = vmul.f32 %v1877_v3, %v2424_v30  ;;  %1898 = vpow2.f32 %v742_v53  ;;  %v744_v25 = vmul.f32 1.442695, %v715_v57 }
 0x2f3   :  { %v1881_v24 = vpop.eup %1880  ;;  %v783_v16 = vmul.f32 %v1879_v6, %v2428_v38  ;;  %1900 = vpow2.f32 %v748_v0  ;;  %v2008_v6 = vmov 0.0|0.0  }
 0x2f4   :  { %v1883_v17 = vpop.eup %1882  ;;  %v799_v54 = vpack.c.bf16 %v785_v51, %v784_v2  ;;  %v760_v58 = vadd.f32 1.0, %v1881_v24  ;;  %1902 = vpow2.f32 %v744_v25  ;;  %1681 = vmatprep.subr.bf16.mxu1 %v2008_v6 }
 0x2f5   :  { %v1885_v59 = vpop.eup %1884  ;;  %v758_v61 = vadd.f32 1.0, %v1883_v17  ;;  %v798_v1 = vpack.c.bf16 %v783_v16, %v782_v43 }
 0x2f6   :  { %v1887_v31 = vpop.eup %1886  ;;  %1904 = vrcp.f32 %v760_v58  ;;  %v761_v32 = vadd.f32 1.0, %v1885_v59 }
 0x2f7   :  { %v1889_v44 = vpop.eup %1888  ;;  %1906 = vrcp.f32 %v758_v61  ;;  %v759_v30 = vadd.f32 1.0, %v1887_v31  ;;  %1604 = vmatprep.mubr.bf16.mxu1 %v798_v1 }
 0x2f8   :  { %v1891_v4 = vpop.eup %1890  ;;  %1908 = vrcp.f32 %v761_v32  ;;  %1605 = vmatmul.mubr.bf16.vlgmr.msra.gmra.mrb[16].mxu1 %v799_v54  ;;  %v788_v42 = vmul.f32 %v1889_v44, %v2433_v47  ;;  %v2010_v54 = vmov 0.0  }
 0x2f9   :  { %v1893_v34 = vpop.eup %1892  ;;  %1910 = vrcp.f32 %v759_v30  ;;  %v786_v60 = vmul.f32 %v1891_v4, %v2436_v12 }
 0x2fa   :  { %v1895_v38 = vpop.eup %1894  ;;  %v789_v13 = vmul.f32 %v1893_v34, %v2440_v62 }
 0x2fb   :  { %v1897_v15 = vpop.eup %1896  ;;  %v787_v5 = vmul.f32 %v1895_v38, %v2444_v50 }
 0x2fc   :  { %v1899_v7 = vpop.eup %1898  ;;  %v764_v20 = vadd.f32 1.0, %v1897_v15  ;;  %v801_v8 = vpack.c.bf16 %v789_v13, %v788_v42 }
 0x2fd   :  { %v1901_v22 = vpop.eup %1900  ;;  %v762_v28 = vadd.f32 1.0, %v1899_v7  ;;  %v800_v9 = vpack.c.bf16 %v787_v5, %v786_v60 }
 0x2fe   :  { %v1903_v19 = vpop.eup %1902  ;;  %1912 = vrcp.f32 %v764_v20  ;;  %v765_v21 = vadd.f32 1.0, %v1901_v22 }
 0x2ff   :  { %1914 = vrcp.f32 %v762_v28  ;;  %v763_v26 = vadd.f32 1.0, %v1903_v19  ;;  %1608 = vmatprep.mubr.bf16.mxu1 %v800_v9 }
 0x300   :  { %v1905_v47 = vpop.eup %1904  ;;  %1916 = vrcp.f32 %v765_v21  ;;  %1609 = vmatmul.mubr.bf16.gmra.mrb[20].mxu1 %v801_v8 }
 0x301   :  { %v1907_v62 = vpop.eup %1906  ;;  %1918 = vrcp.f32 %v763_v26  ;;  %v792_v50 = vmul.f32 %v1905_v47, %v2449_v18 }
 0x302   :  { %v1909_v12 = vpop.eup %1908  ;;  %v790_v36 = vmul.f32 %v1907_v62, %v2452_v63 }
 0x303   :  { %v1911_v27 = vpop.eup %1910  ;;  %v793_v29 = vmul.f32 %v1909_v12, %v2456_v10 }
 0x304   :  { %v791_v41 = vmul.f32 %v1911_v27, %v2460_v56  ;;  %v2496_v56 = vpop.f32.mrb[32].mxu0 }
 0x305   :  { %v803_v37 = vpack.c.bf16 %v793_v29, %v792_v50  ;;  %v2498_v53 = vpop.f32.mrb[33].mxu0 }
 0x306   :  { %v802_v52 = vpack.c.bf16 %v791_v41, %v790_v36  ;;  %v2500_v57 = vpop.f32.mrb[34].mxu0 }
 0x307   :  { %v2502_v3 = vpop.f32.mrb[35].mxu0 }
 0x308   :  { %v1913_v55 = vpop.eup %1912  ;;  %1612 = vmatprep.mubr.bf16.mxu1 %v802_v52  ;;  %v2504_v0 = vpop.f32.mrb[36].mxu0 }
 0x309   :  { %v1915_v39 = vpop.eup %1914  ;;  %1613 = vmatmul.mubr.bf16.gmra.mrb[24].mxu1 %v803_v37  ;;  %v796_v46 = vmul.f32 %v1913_v55, %v2465_v23  ;;  %v2506_v23 = vpop.f32.mrb[37].mxu0 }
 0x30a   :  { %v1917_v11 = vpop.eup %1916  ;;  %v794_v18 = vmul.f32 %v1915_v39, %v2468_v33 }
 0x30b   :  { %v1919_v45 = vpop.eup %1918  ;;  %v797_v48 = vmul.f32 %v1917_v11, %v2472_v35  ;;  %v2508_v35 = vpop.f32.mrb[38].mxu0 }
 0x30c   :  { %v795_v10 = vmul.f32 %v1919_v45, %v2476_v40  ;;  %v2510_v33 = vpop.f32.mrb[39].mxu0 }
 0x30d   :  { %v805_v49 = vpack.c.bf16 %v797_v48, %v796_v46  ;;  %v2512_v40 = vpop.f32.mrb[40].mxu0 }
 0x30e   :  { %v804_v63 = vpack.c.bf16 %v795_v10, %v794_v18  ;;  %v2515_v2 = vpop.f32.mrb[41].mxu0 }
 0x30f   :  { %v2517_v51 = vpop.f32.mrb[42].mxu0 }
 0x310   :  { %1616 = vmatprep.mubr.bf16.mxu1 %v804_v63  ;;  %v2519_v25 = vpop.f32.mrb[43].mxu0 }
 0x311   :  { %1617 = vmatmul.mubr.bf16.gmra.mrb[28].mxu1 %v805_v49  ;;  %v2521_v24 = vpop.f32.mrb[44].mxu0 }
 0x312   :  { %v2523_v43 = vpop.f32.mrb[45].mxu0  ;;  %1678 = vmatprep.mubr.msk.f32.mxu1 %vm2009_vm2, %v2010_v54 }
 0x313   :  { %v2525_v16 = vpop.f32.mrb[46].mxu0 }
 0x314   :  { %v2527_v17 = vpop.f32.mrb[47].mxu0 }
 0x3cb   :  { %v1606_v58 = vpop.f32.mrb[16].mxu1 }
 0x3cc   :  { %v2530_v59 = vadd.f32 %v1606_v58, %v2267_v14  ;;  %v840_v61 = vpop.f32.mrb[17].mxu1 }
 0x3cd   :  { %v2533_v1 = vadd.f32 %v2267_v14, %v840_v61  ;;  %v1607_v31 = vpop.f32.mrb[18].mxu1 }
 0x3ce   :  { %v905_v32 = vsub.f32 0.0, %v2530_v59  ;;  %v2537_v44 = vadd.f32 %v1607_v31, %v2267_v14  ;;  %v843_v30 = vpop.f32.mrb[19].mxu1 }
 0x3cf   :  { %v903_v4 = vsub.f32 0.0, %v2533_v1  ;;  %v2541_v34 = vadd.f32 %v2267_v14, %v843_v30 }
 0x3d0   :  { %v923_v38 = vmul.f32 1.442695, %v905_v32  ;;  %v906_v42 = vsub.f32 0.0, %v2537_v44 }
 0x3d1   :  { %v919_v13 = vmul.f32 1.442695, %v903_v4  ;;  %v904_v15 = vsub.f32 0.0, %v2541_v34 }
 0x3d2   :  { %1920 = vpow2.f32 %v923_v38  ;;  %v925_v60 = vmul.f32 1.442695, %v906_v42 }
 0x3d3   :  { %1922 = vpow2.f32 %v919_v13  ;;  %v921_v5 = vmul.f32 1.442695, %v904_v15  ;;  %v1610_v7 = vpop.f32.mrb[20].mxu1 }
 0x3d4   :  { %1924 = vpow2.f32 %v925_v60  ;;  %v2546_v20 = vadd.f32 %v1610_v7, %v2267_v14  ;;  %v856_v8 = vpop.f32.mrb[21].mxu1 }
 0x3d5   :  { %1926 = vpow2.f32 %v921_v5  ;;  %v2549_v22 = vadd.f32 %v2267_v14, %v856_v8  ;;  %v1611_v28 = vpop.f32.mrb[22].mxu1 }
 0x3d6   :  { %v909_v9 = vsub.f32 0.0, %v2546_v20  ;;  %v2553_v19 = vadd.f32 %v1611_v28, %v2267_v14  ;;  %v859_v21 = vpop.f32.mrb[23].mxu1 }
 0x3d7   :  { %v907_v26 = vsub.f32 0.0, %v2549_v22  ;;  %v2557_v47 = vadd.f32 %v2267_v14, %v859_v21 }
 0x3d8   :  { %v931_v62 = vmul.f32 1.442695, %v909_v9  ;;  %v910_v12 = vsub.f32 0.0, %v2553_v19 }
 0x3d9   :  { %v927_v27 = vmul.f32 1.442695, %v907_v26  ;;  %v908_v50 = vsub.f32 0.0, %v2557_v47 }
 0x3da   :  { %1928 = vpow2.f32 %v931_v62  ;;  %v933_v29 = vmul.f32 1.442695, %v910_v12 }
 0x3db   :  { %1930 = vpow2.f32 %v927_v27  ;;  %v929_v36 = vmul.f32 1.442695, %v908_v50 }
 0x3dc   :  { %v1921_v41 = vpop.eup %1920  ;;  %1932 = vpow2.f32 %v933_v29  ;;  %v1614_v37 = vpop.f32.mrb[24].mxu1 }
 0x3dd   :  { %v1923_v52 = vpop.eup %1922  ;;  %v953_v55 = vadd.f32 1.0, %v1921_v41  ;;  %1934 = vpow2.f32 %v929_v36  ;;  %v2562_v39 = vadd.f32 %v1614_v37, %v2267_v14  ;;  %v872_v11 = vpop.f32.mrb[25].mxu1 }
 0x3de   :  { %v1925_v45 = vpop.eup %1924  ;;  %v951_v46 = vadd.f32 1.0, %v1923_v52  ;;  %v2565_v48 = vadd.f32 %v2267_v14, %v872_v11  ;;  %v1615_v18 = vpop.f32.mrb[26].mxu1 }
 0x3df   :  { %v1927_v10 = vpop.eup %1926  ;;  %1936 = vrcp.f32 %v953_v55  ;;  %v954_v49 = vadd.f32 1.0, %v1925_v45  ;;  %v913_v63 = vsub.f32 0.0, %v2562_v39  ;;  %v2569_v54 = vadd.f32 %v1615_v18, %v2267_v14  ;;  %v875_v58 = vpop.f32.mrb[27].mxu1 }
 0x3e0   :  { %1938 = vrcp.f32 %v951_v46  ;;  %v952_v61 = vadd.f32 1.0, %v1927_v10  ;;  %v911_v31 = vsub.f32 0.0, %v2565_v48  ;;  %v2573_v32 = vadd.f32 %v2267_v14, %v875_v58 }
 0x3e1   :  { %1940 = vrcp.f32 %v954_v49  ;;  %v939_v30 = vmul.f32 1.442695, %v913_v63  ;;  %v914_v4 = vsub.f32 0.0, %v2569_v54 }
 0x3e2   :  { %1942 = vrcp.f32 %v952_v61  ;;  %v935_v38 = vmul.f32 1.442695, %v911_v31  ;;  %v912_v42 = vsub.f32 0.0, %v2573_v32 }
 0x3e3   :  { %1944 = vpow2.f32 %v939_v30  ;;  %v941_v13 = vmul.f32 1.442695, %v914_v4 }
 0x3e4   :  { %v1929_v15 = vpop.eup %1928  ;;  %1946 = vpow2.f32 %v935_v38  ;;  %v937_v60 = vmul.f32 1.442695, %v912_v42  ;;  %v1618_v5 = vpop.f32.mrb[28].mxu1 }
 0x3e5   :  { %v1931_v7 = vpop.eup %1930  ;;  %v957_v8 = vadd.f32 1.0, %v1929_v15  ;;  %1948 = vpow2.f32 %v941_v13  ;;  %v2578_v28 = vadd.f32 %v1618_v5, %v2267_v14  ;;  %v888_v9 = vpop.f32.mrb[29].mxu1 }
 0x3e6   :  { %v1933_v21 = vpop.eup %1932  ;;  %v955_v26 = vadd.f32 1.0, %v1931_v7  ;;  %1950 = vpow2.f32 %v937_v60  ;;  %v2581_v62 = vadd.f32 %v2267_v14, %v888_v9  ;;  %v1619_v12 = vpop.f32.mrb[30].mxu1 }
 0x3e7   :  { %v1935_v27 = vpop.eup %1934  ;;  %1952 = vrcp.f32 %v957_v8  ;;  %v958_v50 = vadd.f32 1.0, %v1933_v21  ;;  %v917_v29 = vsub.f32 0.0, %v2578_v28  ;;  %v2585_v36 = vadd.f32 %v1619_v12, %v2267_v14  ;;  %v891_v41 = vpop.f32.mrb[31].mxu1 }
 0x3e8   :  { %1954 = vrcp.f32 %v955_v26  ;;  %v956_v37 = vadd.f32 1.0, %v1935_v27  ;;  %v915_v52 = vsub.f32 0.0, %v2581_v62  ;;  %v2589_v55 = vadd.f32 %v2267_v14, %v891_v41 }
 0x3e9   :  { %v1937_v11 = vpop.eup %1936  ;;  %1956 = vrcp.f32 %v958_v50  ;;  %v947_v45 = vmul.f32 1.442695, %v917_v29  ;;  %v918_v46 = vsub.f32 0.0, %v2585_v36 }
 0x3ea   :  { %v1939_v18 = vpop.eup %1938  ;;  %1958 = vrcp.f32 %v956_v37  ;;  %v943_v10 = vmul.f32 1.442695, %v915_v52  ;;  %v916_v49 = vsub.f32 0.0, %v2589_v55  ;;  %v985_v63 = vmul.f32 %v1937_v11, %v2530_v59 }
 0x3eb   :  { %v1941_v58 = vpop.eup %1940  ;;  %1960 = vpow2.f32 %v947_v45  ;;  %v949_v61 = vmul.f32 1.442695, %v918_v46  ;;  %v983_v31 = vmul.f32 %v1939_v18, %v2533_v1 }
 0x3ec   :  { %v1943_v30 = vpop.eup %1942  ;;  %1962 = vpow2.f32 %v943_v10  ;;  %v945_v14 = vmul.f32 1.442695, %v916_v49  ;;  %v986_v4 = vmul.f32 %v1941_v58, %v2537_v44  ;;  %v1212_v38 = vsub.f32 %v985_v63, %v2502_v3 }
 0x3ed   :  { %v1945_v42 = vpop.eup %1944  ;;  %1964 = vpow2.f32 %v949_v61  ;;  %v984_v13 = vmul.f32 %v1943_v30, %v2541_v34  ;;  %v1210_v15 = vsub.f32 %v983_v31, %v2498_v53 }
 0x3ee   :  { %v1947_v60 = vpop.eup %1946  ;;  %v961_v59 = vadd.f32 1.0, %v1945_v42  ;;  %1966 = vpow2.f32 %v945_v14  ;;  %v1213_v5 = vsub.f32 %v986_v4, %v2500_v57  ;;  %v1228_v7 = vmul.f32 %v1212_v38, %v1212_v38 }
 0x3ef   :  { %v1949_v1 = vpop.eup %1948  ;;  %v959_v8 = vadd.f32 1.0, %v1947_v60  ;;  %v1211_v9 = vsub.f32 %v984_v13, %v2496_v56  ;;  %v1226_v21 = vmul.f32 %v1210_v15, %v1210_v15 }
 0x3f0   :  { %v1951_v44 = vpop.eup %1950  ;;  %1968 = vrcp.f32 %v961_v59  ;;  %v962_v3 = vadd.f32 1.0, %v1949_v1  ;;  %v1229_v26 = vmul.f32 %v1213_v5, %v1213_v5  ;;  %v1244_v12 = vmax.f32 %v1228_v7, 1e-12 }
 0x3f1   :  { %v1953_v27 = vpop.eup %1952  ;;  %1970 = vrcp.f32 %v959_v8  ;;  %v960_v34 = vadd.f32 1.0, %v1951_v44  ;;  %v1227_v53 = vmul.f32 %v1211_v9, %v1211_v9  ;;  %v1242_v50 = vmax.f32 %v1226_v21, 1e-12 }
 0x3f2   :  { %v1955_v29 = vpop.eup %1954  ;;  %1972 = vrcp.f32 %v962_v3  ;;  %v1245_v41 = vmax.f32 %v1229_v26, 1e-12  ;;  %v989_v57 = vmul.f32 %v1953_v27, %v2546_v20  ;;  %v1260_v46 = vmin.f32 %v1244_v12, 1e+12 }
 0x3f3   :  { %v1957_v37 = vpop.eup %1956  ;;  %1974 = vrcp.f32 %v960_v34  ;;  %v1243_v52 = vmax.f32 %v1227_v53, 1e-12  ;;  %v987_v56 = vmul.f32 %v1955_v29, %v2549_v22  ;;  %v1258_v58 = vmin.f32 %v1242_v50, 1e+12 }
 0x3f4   :  { %v1959_v11 = vpop.eup %1958  ;;  %v1261_v45 = vmin.f32 %v1245_v41, 1e+12  ;;  %v990_v18 = vmul.f32 %v1957_v37, %v2553_v19  ;;  %v1216_v10 = vsub.f32 %v989_v57, %v2510_v33 }
 0x3f5   :  { %v1961_v49 = vpop.eup %1960  ;;  %v1259_v63 = vmin.f32 %v1243_v52, 1e+12  ;;  %v988_v61 = vmul.f32 %v1959_v11, %v2557_v47  ;;  %v1214_v31 = vsub.f32 %v987_v56, %v2506_v23 }
 0x3f6   :  { %v1963_v20 = vpop.eup %1962  ;;  %v965_v30 = vadd.f32 1.0, %v1961_v49  ;;  %v1685_v14 = vpack.c.bf16 %v1261_v45, %v1260_v46  ;;  %v1217_v4 = vsub.f32 %v990_v18, %v2508_v35  ;;  %v1232_v22 = vmul.f32 %v1216_v10, %v1216_v10 }
 0x3f7   :  { %v1965_v38 = vpop.eup %1964  ;;  %v963_v42 = vadd.f32 1.0, %v1963_v20  ;;  %v1682_v13 = vpack.c.bf16 %v1259_v63, %v1258_v58  ;;  %v1215_v19 = vsub.f32 %v988_v61, %v2504_v0  ;;  %v1230_v15 = vmul.f32 %v1214_v31, %v1214_v31 }
 0x3f8   :  { %v1967_v33 = vpop.eup %1966  ;;  %1976 = vrcp.f32 %v965_v30  ;;  %v966_v60 = vadd.f32 1.0, %v1965_v38  ;;  %v1233_v59 = vmul.f32 %v1217_v4, %v1217_v4  ;;  %v1248_v5 = vmax.f32 %v1232_v22, 1e-12 }
 0x3f9   :  { %1978 = vrcp.f32 %v963_v42  ;;  %v964_v47 = vadd.f32 1.0, %v1967_v33  ;;  %v1231_v23 = vmul.f32 %v1215_v19, %v1215_v19  ;;  %v1246_v7 = vmax.f32 %v1230_v15, 1e-12  ;;  %1683 = vmatpush3.bf16.xpose.msra.mxu1 %v1682_v13 }
 0x3fa   :  { %v1969_v1 = vpop.eup %1968  ;;  %1980 = vrcp.f32 %v966_v60  ;;  %v1249_v35 = vmax.f32 %v1233_v59, 1e-12  ;;  %1684 = vmatprep.subr.bf16.mxu1 %v2008_v6  ;;  %v1264_v3 = vmin.f32 %v1248_v5, 1e+12 }
 0x3fb   :  { %v1971_v8 = vpop.eup %1970  ;;  %1982 = vrcp.f32 %v964_v47  ;;  %v1247_v9 = vmax.f32 %v1231_v23, 1e-12  ;;  %v993_v0 = vmul.f32 %v1969_v1, %v2562_v39  ;;  %v1262_v34 = vmin.f32 %v1246_v7, 1e+12 }
 0x3fc   :  { %v1973_v21 = vpop.eup %1972  ;;  %v1265_v44 = vmin.f32 %v1249_v35, 1e+12  ;;  %v991_v26 = vmul.f32 %v1971_v8, %v2565_v48  ;;  %v2011_v7 = vmov 1.0  }
 0x3fd   :  { %v1975_v12 = vpop.eup %1974  ;;  %v1263_v27 = vmin.f32 %v1247_v9, 1e+12  ;;  %v994_v53 = vmul.f32 %v1973_v21, %v2569_v54  ;;  %v1220_v50 = vsub.f32 %v993_v0, %v2519_v25 }
 0x3fe   :  { %v1691_v29 = vpack.c.bf16 %v1265_v44, %v1264_v3  ;;  %v992_v41 = vmul.f32 %v1975_v12, %v2573_v32  ;;  %v1218_v57 = vsub.f32 %v991_v26, %v2515_v2 }
 0x3ff   :  { %v1688_v37 = vpack.c.bf16 %v1263_v27, %v1262_v34  ;;  %v1221_v39 = vsub.f32 %v994_v53, %v2517_v51  ;;  %v1236_v52 = vmul.f32 %v1220_v50, %v1220_v50 }
 0x400   :  { %v1219_v56 = vsub.f32 %v992_v41, %v2512_v40  ;;  %v1234_v11 = vmul.f32 %v1218_v57, %v1218_v57 }
 0x401   :  { %v1237_v48 = vmul.f32 %v1221_v39, %v1221_v39  ;;  %v1252_v45 = vmax.f32 %v1236_v52, 1e-12  ;;  %1686 = vmatpush3.bf16.xpose.msra.mxu1 %v1685_v14 }
 0x402   :  { %v1977_v46 = vpop.eup %1976  ;;  %v1235_v18 = vmul.f32 %v1219_v56, %v1219_v56  ;;  %v1250_v54 = vmax.f32 %v1234_v11, 1e-12  ;;  %1687 = vmatprep.subr.bf16.mxu1 %v2008_v6 }
 0x403   :  { %v1979_v25 = vpop.eup %1978  ;;  %v1253_v10 = vmax.f32 %v1237_v48, 1e-12  ;;  %v997_v32 = vmul.f32 %v1977_v46, %v2578_v28  ;;  %v1268_v40 = vmin.f32 %v1252_v45, 1e+12 }
 0x404   :  { %v1981_v2 = vpop.eup %1980  ;;  %v1251_v49 = vmax.f32 %v1235_v18, 1e-12  ;;  %v995_v51 = vmul.f32 %v1979_v25, %v2581_v62  ;;  %v1266_v30 = vmin.f32 %v1250_v54, 1e+12 }
 0x405   :  { %v1983_v63 = vpop.eup %1982  ;;  %v1269_v58 = vmin.f32 %v1253_v10, 1e+12  ;;  %v998_v61 = vmul.f32 %v1981_v2, %v2585_v36  ;;  %v1224_v31 = vsub.f32 %v997_v32, %v2527_v17 }
 0x406   :  { %v1267_v20 = vmin.f32 %v1251_v49, 1e+12  ;;  %v996_v14 = vmul.f32 %v1983_v63, %v2589_v55  ;;  %v1222_v4 = vsub.f32 %v995_v51, %v2523_v43 }
 0x407   :  { %v1697_v22 = vpack.c.bf16 %v1269_v58, %v1268_v40  ;;  %v1225_v28 = vsub.f32 %v998_v61, %v2525_v16  ;;  %v1240_v38 = vmul.f32 %v1224_v31, %v1224_v31 }
 0x408   :  { %v1694_v42 = vpack.c.bf16 %v1267_v20, %v1266_v30  ;;  %v1223_v62 = vsub.f32 %v996_v14, %v2521_v24  ;;  %v1238_v13 = vmul.f32 %v1222_v4, %v1222_v4  ;;  %v1274_v24 = vlaneseq }
 0x409   :  { %v1241_v19 = vmul.f32 %v1225_v28, %v1225_v28  ;;  %v1256_v15 = vmax.f32 %v1240_v38, 1e-12  ;;  %1689 = vmatpush3.bf16.xpose.msra.mxu1 %v1688_v37 }
 0x40a   :  { %v1239_v36 = vmul.f32 %v1223_v62, %v1223_v62  ;;  %v1254_v33 = vmax.f32 %v1238_v13, 1e-12  ;;  %1690 = vmatprep.subr.bf16.mxu1 %v2008_v6  ;;  %v1275_v23 = vand.u32 127, %v1274_v24 }
 0x40b   :  { %v1257_v17 = vmax.f32 %v1241_v19, 1e-12  ;;  %v1272_v59 = vmin.f32 %v1256_v15, 1e+12 }
 0x40c   :  { %v1255_v60 = vmax.f32 %v1239_v36, 1e-12  ;;  %v1270_v5 = vmin.f32 %v1254_v33, 1e+12  ;;  %vm1276_vm3 = vcmp.lt.s32.totalorder %v1275_v23, 16 }
 0x40d   :  { %v1273_v55 = vmin.f32 %v1257_v17, 1e+12 }
 0x40e   :  { %v1271_v43 = vmin.f32 %v1255_v60, 1e+12 }
 0x40f   :  { %v1703_v47 = vpack.c.bf16 %v1273_v55, %v1272_v59 }
 0x410   :  { %v1700_v16 = vpack.c.bf16 %v1271_v43, %v1270_v5 }
 0x411   :  { %1692 = vmatpush3.bf16.xpose.msra.mxu1 %v1691_v29 }
 0x412   :  { %1693 = vmatprep.subr.bf16.mxu1 %v2008_v6 }
 0x419   :  { %1695 = vmatpush3.bf16.xpose.msra.mxu1 %v1694_v42 }
 0x41a   :  { %1696 = vmatprep.subr.bf16.mxu1 %v2008_v6 }
 0x421   :  { %1698 = vmatpush3.bf16.xpose.msra.mxu1 %v1697_v22 }
 0x422   :  { %1699 = vmatprep.subr.bf16.mxu1 %v2008_v6 }
 0x429   :  { %1701 = vmatpush3.bf16.xpose.msra.mxu1 %v1700_v16 }
 0x42a   :  { %1702 = vmatprep.subr.bf16.mxu1 %v2008_v6 }
 0x431   :  { %1704 = vmatpush3.bf16.xpose.msra.mxu1 %v1703_v47 }
 0x438   :  { %1679 = vmatmul.mubr.msk.f32.vlgmr.msra.gmra.mrb[32].mxu1 %vm1276_vm3, %v2011_v7 }
 0x50b   :  { %v1345_v1 = vpop.f32.mrb[32].mxu1 }
 0x50c   :  { %v1349_v35 = vmul.f32 0.0625, %v1345_v1  ;;  %v1680_v8 = vpop.f32.mrb[33].mxu1 }
 0x50e   :  { %v1350_v9 = vadd.f32 5e-12, %v1349_v35 }
 0x510   :  { %1351 = vst [vmem:[#allocation2] sm:$0x1] %v1350_v9 }
 0x511   :  { %1995 = shalt.err (!%p1992_p4)
}
 0x512   :  { %s1996_s21 = scalar_lea.hbm %s2651_s7, 16 }
 0x513   :  { %p1997_p5 = scmp.ne.s32.totalorder %s2651_s7, %s1996_s21  ;;  %p2000_p6 = scmp.lt.u32.totalorder %s1996_s21, %s2651_s7 }
 0x515   :  { %p2002_p7 = pnand %p2000_p6, %p1997_p5 }
 0x517   :  { %2005 = shalt.err (!%p2002_p7)
}
 0x518   :  { %1361 = dma.vmem_to_hbm [thread:$0]  %s1359_s17, 16, %s2651_s7, [#allocation3]  }
 0x519   :  { %2006 = dma.done.wait [#allocation3], 16  }
 0x51a   :  { %2007 = vsyncadd [#allocation3], 4294967280 }
 0x51b   :  { %1365 = vsyncpa [#allocation3], 1 }

// kernel: tpu_custom_call.1
= control target key start
LH: loop header
LB: loop body
LE: loop exit
PB: predicated region body
PF: predicated region fallthrough
CT: control target
= control target key end

     0   :  { %vm107_vm0 = vcmask 261120   ;;  %s2644_s0 = inlined_call_operand.vmem [shape: bf16[128,32], index: 0, kind: input, shape index: {}]   ;;  %s2645_s1 = inlined_call_operand.vmem [shape: f32[128,8], index: 1, kind: input, shape index: {}]   ;;  %s2646_s2 = inlined_call_operand.vmem [shape: bf16[32,128], index: 2, kind: input, shape index: {}]   ;;  %s2647_s3 = inlined_call_operand.vmem [shape: f32[1,128], index: 3, kind: input, shape index: {}]   ;;  %s2648_s4 = inlined_call_operand.vmem [shape: bf16[128,128], index: 4, kind: input, shape index: {}]   ;;  %s2649_s5 = inlined_call_operand.vmem [shape: f32[1,128], index: 5, kind: input, shape index: {}]   ;;  %s2650_s6 = inlined_call_operand.vmem [shape: f32[8,128], index: 6, kind: input, shape index: {}]   ;;  %s2651_s7 = inlined_call_operand.hbm [shape: f32[1,128], index: 7, kind: output, shape index: {}]  }
   0x1   :  { %v1710_v0 = vld [vmem:[%s2646_s2] sm:$0xff]   ;;  %v1711_v1 = vld [vmem:[%s2646_s2 + $0x8] sm:$0xff]   ;;  %v1714_v4 = vld [vmem:[%s2644_s0 + $0x10] sm:$0xff]  }
   0x2   :  { %1504 = vmatprep.subr.bf16.mxu0 %v1710_v0  ;;  %v1712_v2 = vld [vmem:[%s2644_s0] sm:$0xff]   ;;  %v1713_v3 = vld [vmem:[%s2644_s0 + $0x8] sm:$0xff]   ;;  %v1715_v5 = vld [vmem:[%s2644_s0 + $0x18] sm:$0xff]  }
   0x3   :  { %1505 = vmatpush3.bf16.msra.mxu0 %v1710_v0  ;;  %1508 = vmatprep.mubr.msk.bf16.mxu0 %vm107_vm0, %v1712_v2  ;;  %v1716_v6 = vld [vmem:[%s2644_s0 + $0x20] sm:$0xff]  }
   0x4   :  { %1506 = vmatprep.subr.bf16.mxu0 %v1711_v1 }
   0x7   :  { %1507 = vmatpush3.bf16.msra.mxu0 %v1711_v1 }
   0xa   :  { %1509 = vmatmul.mubr.msk.bf16.vlgmr.msra.gmra.mrb[0].mxu0 %vm107_vm0, %v1713_v3 }
   0xb   :  { %1512 = vmatprep.mubr.msk.bf16.mxu0 %vm107_vm0, %v1714_v4 }
   0xc   :  { %12 = vsyncpa [#allocation3], 0  ;;  %v1717_v7 = vld [vmem:[%s2644_s0 + $0x28] sm:$0xff]   ;;  %v1718_v8 = vld [vmem:[%s2644_s0 + $0x30] sm:$0xff]   ;;  %vm1016_vm1 = vcmask 64512   ;;  %vm2009_vm2 = vmmov 0  }
   0xd   :  { %v1719_v9 = vld [vmem:[%s2644_s0 + $0x38] sm:$0xff]   ;;  %v2094_v10 = vld [vmem:[%s2648_s4] sm:$0xff]   ;;  %v2103_v11 = vld [vmem:[%s2648_s4 + $0x8] sm:$0xff]  }
   0xe   :  { %1524 = vmatprep.subr.bf16.mxu1 %v2094_v10  ;;  %1556 = vmatprep.subr.bf16.mxu0 %v2094_v10  ;;  %v2112_v12 = vld [vmem:[%s2648_s4 + $0x10] sm:$0xff]   ;;  %v2121_v13 = vld [vmem:[%s2648_s4 + $0x18] sm:$0xff]   ;;  %v2130_v14 = vld [vmem:[%s2648_s4 + $0x20] sm:$0xff]  }
   0xf   :  { %1525 = vmatpush3.bf16.msra.mxu1 %v2094_v10  ;;  %1557 = vmatpush3.bf16.msra.mxu0 %v2094_v10  ;;  %v2139_v15 = vld [vmem:[%s2648_s4 + $0x28] sm:$0xff]   ;;  %v2148_v16 = vld [vmem:[%s2648_s4 + $0x30] sm:$0xff]   ;;  %v2157_v17 = vld [vmem:[%s2648_s4 + $0x38] sm:$0xff]  }
  0x10   :  { %1526 = vmatprep.subr.bf16.mxu1 %v2103_v11  ;;  %1558 = vmatprep.subr.bf16.mxu0 %v2103_v11  ;;  %v2167_v18 = vld [vmem:[%s2647_s3] ss:$0 sm:$0xff] }
  0x12   :  { %1513 = vmatmul.mubr.msk.bf16.gmra.mrb[4].mxu0 %vm107_vm0, %v1715_v5 }
  0x13   :  { %1516 = vmatprep.mubr.msk.bf16.mxu0 %vm107_vm0, %v1716_v6  ;;  %1527 = vmatpush3.bf16.msra.mxu1 %v2103_v11 }
  0x14   :  { %1559 = vmatpush3.bf16.msra.mxu0 %v2103_v11  ;;  %1528 = vmatprep.subr.bf16.mxu1 %v2112_v12 }
  0x15   :  { %1560 = vmatprep.subr.bf16.mxu0 %v2112_v12 }
  0x17   :  { %1529 = vmatpush3.bf16.msra.mxu1 %v2112_v12 }
  0x18   :  { %1561 = vmatpush3.bf16.msra.mxu0 %v2112_v12  ;;  %1530 = vmatprep.subr.bf16.mxu1 %v2121_v13 }
  0x19   :  { %1562 = vmatprep.subr.bf16.mxu0 %v2121_v13 }
  0x1a   :  { %1517 = vmatmul.mubr.msk.bf16.gmra.mrb[8].mxu0 %vm107_vm0, %v1717_v7 }
  0x1b   :  { %1520 = vmatprep.mubr.msk.bf16.mxu0 %vm107_vm0, %v1718_v8  ;;  %1531 = vmatpush3.bf16.msra.mxu1 %v2121_v13 }
  0x1c   :  { %1563 = vmatpush3.bf16.msra.mxu0 %v2121_v13  ;;  %1532 = vmatprep.subr.bf16.mxu1 %v2130_v14 }
  0x1d   :  { %1564 = vmatprep.subr.bf16.mxu0 %v2130_v14 }
  0x1f   :  { %1533 = vmatpush3.bf16.msra.mxu1 %v2130_v14 }
  0x20   :  { %1565 = vmatpush3.bf16.msra.mxu0 %v2130_v14  ;;  %1534 = vmatprep.subr.bf16.mxu1 %v2139_v15 }
  0x21   :  { %1566 = vmatprep.subr.bf16.mxu0 %v2139_v15 }
  0x22   :  { %1521 = vmatmul.mubr.msk.bf16.gmra.mrb[12].mxu0 %vm107_vm0, %v1719_v9 }
  0x23   :  { %1535 = vmatpush3.bf16.msra.mxu1 %v2139_v15 }
  0x24   :  { %1567 = vmatpush3.bf16.msra.mxu0 %v2139_v15  ;;  %1536 = vmatprep.subr.bf16.mxu1 %v2148_v16 }
  0x25   :  { %1568 = vmatprep.subr.bf16.mxu0 %v2148_v16 }
  0x27   :  { %1537 = vmatpush3.bf16.msra.mxu1 %v2148_v16 }
  0x28   :  { %1569 = vmatpush3.bf16.msra.mxu0 %v2148_v16  ;;  %1538 = vmatprep.subr.bf16.mxu1 %v2157_v17 }
  0x29   :  { %1570 = vmatprep.subr.bf16.mxu0 %v2157_v17 }
  0x2b   :  { %1539 = vmatpush3.bf16.msra.mxu1 %v2157_v17 }
  0x2c   :  { %1571 = vmatpush3.bf16.msra.mxu0 %v2157_v17  ;;  %1588 = vmatprep.subr.bf16.mxu1 %v2094_v10 }
  0xdd   :  { %v1510_v19 = vpop.f32.mrb[0].mxu0 }
  0xde   :  { %v2170_v20 = vadd.f32 %v1510_v19, %v2167_v18  ;;  %v166_v21 = vpop.f32.mrb[1].mxu0 }
  0xdf   :  { %v2173_v22 = vadd.f32 %v2167_v18, %v166_v21  ;;  %v1511_v23 = vpop.f32.mrb[2].mxu0 }
  0xe0   :  { %v231_v24 = vsub.f32 0.0, %v2170_v20  ;;  %v2177_v25 = vadd.f32 %v1511_v23, %v2167_v18  ;;  %v169_v26 = vpop.f32.mrb[3].mxu0 }
  0xe1   :  { %v229_v27 = vsub.f32 0.0, %v2173_v22  ;;  %v2181_v28 = vadd.f32 %v2167_v18, %v169_v26 }
  0xe2   :  { %v249_v29 = vmul.f32 1.442695, %v231_v24  ;;  %v232_v30 = vsub.f32 0.0, %v2177_v25 }
  0xe3   :  { %v245_v31 = vmul.f32 1.442695, %v229_v27  ;;  %v230_v32 = vsub.f32 0.0, %v2181_v28 }
  0xe4   :  { %1728 = vpow2.f32 %v249_v29  ;;  %v251_v33 = vmul.f32 1.442695, %v232_v30 }
  0xe5   :  { %1730 = vpow2.f32 %v245_v31  ;;  %v247_v34 = vmul.f32 1.442695, %v230_v32  ;;  %v1514_v35 = vpop.f32.mrb[4].mxu0 }
  0xe6   :  { %1732 = vpow2.f32 %v251_v33  ;;  %v2186_v36 = vadd.f32 %v1514_v35, %v2167_v18  ;;  %v182_v37 = vpop.f32.mrb[5].mxu0 }
  0xe7   :  { %1734 = vpow2.f32 %v247_v34  ;;  %v2189_v38 = vadd.f32 %v2167_v18, %v182_v37  ;;  %v1515_v39 = vpop.f32.mrb[6].mxu0 }
  0xe8   :  { %v235_v40 = vsub.f32 0.0, %v2186_v36  ;;  %v2193_v41 = vadd.f32 %v1515_v39, %v2167_v18  ;;  %v185_v42 = vpop.f32.mrb[7].mxu0 }
  0xe9   :  { %v233_v43 = vsub.f32 0.0, %v2189_v38  ;;  %v2197_v44 = vadd.f32 %v2167_v18, %v185_v42 }
  0xea   :  { %v257_v45 = vmul.f32 1.442695, %v235_v40  ;;  %v236_v46 = vsub.f32 0.0, %v2193_v41 }
  0xeb   :  { %v253_v47 = vmul.f32 1.442695, %v233_v43  ;;  %v234_v48 = vsub.f32 0.0, %v2197_v44 }
  0xec   :  { %1736 = vpow2.f32 %v257_v45  ;;  %v259_v49 = vmul.f32 1.442695, %v236_v46 }
  0xed   :  { %1738 = vpow2.f32 %v253_v47  ;;  %v255_v50 = vmul.f32 1.442695, %v234_v48  ;;  %v1518_v51 = vpop.f32.mrb[8].mxu0 }
  0xee   :  { %v1729_v52 = vpop.eup %1728  ;;  %1740 = vpow2.f32 %v259_v49  ;;  %v2202_v53 = vadd.f32 %v1518_v51, %v2167_v18  ;;  %v198_v54 = vpop.f32.mrb[9].mxu0 }
  0xef   :  { %v1731_v55 = vpop.eup %1730  ;;  %v279_v56 = vadd.f32 1.0, %v1729_v52  ;;  %1742 = vpow2.f32 %v255_v50  ;;  %v2205_v57 = vadd.f32 %v2167_v18, %v198_v54  ;;  %v1519_v58 = vpop.f32.mrb[10].mxu0 }
  0xf0   :  { %v1733_v59 = vpop.eup %1732  ;;  %v277_v60 = vadd.f32 1.0, %v1731_v55  ;;  %v239_v61 = vsub.f32 0.0, %v2202_v53  ;;  %v2209_v62 = vadd.f32 %v1519_v58, %v2167_v18  ;;  %v201_v63 = vpop.f32.mrb[11].mxu0 }
  0xf1   :  { %v1735_v0 = vpop.eup %1734  ;;  %1744 = vrcp.f32 %v279_v56  ;;  %v280_v1 = vadd.f32 1.0, %v1733_v59  ;;  %v237_v2 = vsub.f32 0.0, %v2205_v57  ;;  %v2213_v3 = vadd.f32 %v2167_v18, %v201_v63 }
  0xf2   :  { %1746 = vrcp.f32 %v277_v60  ;;  %v278_v4 = vadd.f32 1.0, %v1735_v0  ;;  %v265_v5 = vmul.f32 1.442695, %v239_v61  ;;  %v240_v6 = vsub.f32 0.0, %v2209_v62 }
  0xf3   :  { %1748 = vrcp.f32 %v280_v1  ;;  %v261_v7 = vmul.f32 1.442695, %v237_v2  ;;  %v238_v8 = vsub.f32 0.0, %v2213_v3 }
  0xf4   :  { %1750 = vrcp.f32 %v278_v4  ;;  %v267_v9 = vmul.f32 1.442695, %v240_v6 }
  0xf5   :  { %1752 = vpow2.f32 %v265_v5  ;;  %v263_v19 = vmul.f32 1.442695, %v238_v8  ;;  %v1522_v21 = vpop.f32.mrb[12].mxu0 }
  0xf6   :  { %v1737_v23 = vpop.eup %1736  ;;  %1754 = vpow2.f32 %v261_v7  ;;  %v2218_v24 = vadd.f32 %v1522_v21, %v2167_v18  ;;  %v214_v26 = vpop.f32.mrb[13].mxu0 }
  0xf7   :  { %v1739_v27 = vpop.eup %1738  ;;  %v283_v29 = vadd.f32 1.0, %v1737_v23  ;;  %1756 = vpow2.f32 %v267_v9  ;;  %v2221_v30 = vadd.f32 %v2167_v18, %v214_v26  ;;  %v1523_v31 = vpop.f32.mrb[14].mxu0 }
  0xf8   :  { %v1741_v32 = vpop.eup %1740  ;;  %v281_v33 = vadd.f32 1.0, %v1739_v27  ;;  %1758 = vpow2.f32 %v263_v19  ;;  %v243_v34 = vsub.f32 0.0, %v2218_v24  ;;  %v2225_v35 = vadd.f32 %v1523_v31, %v2167_v18  ;;  %v217_v37 = vpop.f32.mrb[15].mxu0 }
  0xf9   :  { %v1743_v39 = vpop.eup %1742  ;;  %1760 = vrcp.f32 %v283_v29  ;;  %v284_v40 = vadd.f32 1.0, %v1741_v32  ;;  %v241_v42 = vsub.f32 0.0, %v2221_v30  ;;  %v2229_v43 = vadd.f32 %v2167_v18, %v217_v37 }
  0xfa   :  { %1762 = vrcp.f32 %v281_v33  ;;  %v282_v45 = vadd.f32 1.0, %v1743_v39  ;;  %v273_v46 = vmul.f32 1.442695, %v243_v34  ;;  %v244_v47 = vsub.f32 0.0, %v2225_v35 }
  0xfb   :  { %v1745_v48 = vpop.eup %1744  ;;  %1764 = vrcp.f32 %v284_v40  ;;  %v269_v49 = vmul.f32 1.442695, %v241_v42  ;;  %v242_v50 = vsub.f32 0.0, %v2229_v43 }
  0xfc   :  { %v1747_v51 = vpop.eup %1746  ;;  %1766 = vrcp.f32 %v282_v45  ;;  %v275_v52 = vmul.f32 1.442695, %v244_v47  ;;  %v311_v18 = vmul.f32 %v1745_v48, %v2170_v20 }
  0xfd   :  { %v1749_v54 = vpop.eup %1748  ;;  %1768 = vpow2.f32 %v273_v46  ;;  %v271_v55 = vmul.f32 1.442695, %v242_v50  ;;  %v309_v60 = vmul.f32 %v1747_v51, %v2173_v22 }
  0xfe   :  { %v1751_v56 = vpop.eup %1750  ;;  %v312_v58 = vmul.f32 %v1749_v54, %v2177_v25  ;;  %1770 = vpow2.f32 %v269_v49 }
  0xff   :  { %v1753_v59 = vpop.eup %1752  ;;  %1772 = vpow2.f32 %v275_v52  ;;  %v310_v61 = vmul.f32 %v1751_v56, %v2181_v28 }
 0x100   :  { %v1755_v63 = vpop.eup %1754  ;;  %v287_v0 = vadd.f32 1.0, %v1753_v59  ;;  %1774 = vpow2.f32 %v271_v55  ;;  %v326_v1 = vpack.c.bf16 %v312_v58, %v311_v18 }
 0x101   :  { %v1757_v2 = vpop.eup %1756  ;;  %v285_v4 = vadd.f32 1.0, %v1755_v63  ;;  %v325_v5 = vpack.c.bf16 %v310_v61, %v309_v60 }
 0x102   :  { %v1759_v6 = vpop.eup %1758  ;;  %1776 = vrcp.f32 %v287_v0  ;;  %v288_v7 = vadd.f32 1.0, %v1757_v2 }
 0x103   :  { %v1761_v20 = vpop.eup %1760  ;;  %1778 = vrcp.f32 %v285_v4  ;;  %v286_v25 = vadd.f32 1.0, %v1759_v6  ;;  %1540 = vmatprep.mubr.bf16.mxu1 %v325_v5 }
 0x104   :  { %v1763_v8 = vpop.eup %1762  ;;  %1780 = vrcp.f32 %v288_v7  ;;  %1541 = vmatmul.mubr.bf16.vlgmr.msra.gmra.mrb[0].mxu1 %v326_v1  ;;  %v315_v9 = vmul.f32 %v1761_v20, %v2186_v36 }
 0x105   :  { %v1765_v22 = vpop.eup %1764  ;;  %1782 = vrcp.f32 %v286_v25  ;;  %1589 = vmatpush3.bf16.msra.mxu1 %v2094_v10  ;;  %v313_v23 = vmul.f32 %v1763_v8, %v2189_v38 }
 0x106   :  { %v1767_v28 = vpop.eup %1766  ;;  %v316_v19 = vmul.f32 %v1765_v22, %v2193_v41  ;;  %1590 = vmatprep.subr.bf16.mxu1 %v2103_v11 }
 0x107   :  { %v1769_v21 = vpop.eup %1768  ;;  %v314_v26 = vmul.f32 %v1767_v28, %v2197_v44 }
 0x108   :  { %v1771_v27 = vpop.eup %1770  ;;  %v291_v29 = vadd.f32 1.0, %v1769_v21  ;;  %v328_v31 = vpack.c.bf16 %v316_v19, %v315_v9 }
 0x109   :  { %v1773_v32 = vpop.eup %1772  ;;  %v289_v33 = vadd.f32 1.0, %v1771_v27  ;;  %v327_v34 = vpack.c.bf16 %v314_v26, %v313_v23  ;;  %1591 = vmatpush3.bf16.msra.mxu1 %v2103_v11 }
 0x10a   :  { %v1775_v10 = vpop.eup %1774  ;;  %1784 = vrcp.f32 %v291_v29  ;;  %v292_v36 = vadd.f32 1.0, %v1773_v32  ;;  %1592 = vmatprep.subr.bf16.mxu1 %v2112_v12 }
 0x10b   :  { %1786 = vrcp.f32 %v289_v33  ;;  %v290_v41 = vadd.f32 1.0, %v1775_v10  ;;  %1544 = vmatprep.mubr.bf16.mxu1 %v327_v34 }
 0x10c   :  { %v1777_v37 = vpop.eup %1776  ;;  %1788 = vrcp.f32 %v292_v36  ;;  %1545 = vmatmul.mubr.bf16.gmra.mrb[4].mxu1 %v328_v31 }
 0x10d   :  { %v1779_v38 = vpop.eup %1778  ;;  %1790 = vrcp.f32 %v290_v41  ;;  %1593 = vmatpush3.bf16.msra.mxu1 %v2112_v12  ;;  %v319_v11 = vmul.f32 %v1777_v37, %v2202_v53 }
 0x10e   :  { %v1781_v44 = vpop.eup %1780  ;;  %1594 = vmatprep.subr.bf16.mxu1 %v2121_v13  ;;  %v317_v42 = vmul.f32 %v1779_v38, %v2205_v57 }
 0x10f   :  { %v1783_v39 = vpop.eup %1782  ;;  %v320_v40 = vmul.f32 %v1781_v44, %v2209_v62 }
 0x110   :  { %v318_v45 = vmul.f32 %v1783_v39, %v2213_v3 }
 0x111   :  { %v330_v46 = vpack.c.bf16 %v320_v40, %v319_v11  ;;  %1595 = vmatpush3.bf16.msra.mxu1 %v2121_v13 }
 0x112   :  { %v329_v47 = vpack.c.bf16 %v318_v45, %v317_v42  ;;  %1596 = vmatprep.subr.bf16.mxu1 %v2130_v14 }
 0x114   :  { %v1785_v48 = vpop.eup %1784  ;;  %1548 = vmatprep.mubr.bf16.mxu1 %v329_v47 }
 0x115   :  { %v1787_v12 = vpop.eup %1786  ;;  %1549 = vmatmul.mubr.bf16.gmra.mrb[8].mxu1 %v330_v46  ;;  %v323_v62 = vmul.f32 %v1785_v48, %v2218_v24 }
 0x116   :  { %v1789_v49 = vpop.eup %1788  ;;  %1597 = vmatpush3.bf16.msra.mxu1 %v2130_v14  ;;  %v321_v3 = vmul.f32 %v1787_v12, %v2221_v30  ;;  %v2267_v14 = vld [vmem:[%s2649_s5] ss:$0 sm:$0xff] }
 0x117   :  { %v1791_v53 = vpop.eup %1790  ;;  %v324_v57 = vmul.f32 %v1789_v49, %v2225_v35  ;;  %1598 = vmatprep.subr.bf16.mxu1 %v2139_v15 }
 0x118   :  { %v322_v13 = vmul.f32 %v1791_v53, %v2229_v43 }
 0x119   :  { %v332_v50 = vpack.c.bf16 %v324_v57, %v323_v62 }
 0x11a   :  { %v331_v51 = vpack.c.bf16 %v322_v13, %v321_v3  ;;  %1599 = vmatpush3.bf16.msra.mxu1 %v2139_v15 }
 0x11b   :  { %1600 = vmatprep.subr.bf16.mxu1 %v2148_v16 }
 0x11c   :  { %1552 = vmatprep.mubr.bf16.mxu1 %v331_v51 }
 0x11d   :  { %1553 = vmatmul.mubr.bf16.gmra.mrb[12].mxu1 %v332_v50 }
 0x11e   :  { %1601 = vmatpush3.bf16.msra.mxu1 %v2148_v16 }
 0x11f   :  { %1602 = vmatprep.subr.bf16.mxu1 %v2157_v17 }
 0x122   :  { %1603 = vmatpush3.bf16.msra.mxu1 %v2157_v17 }
 0x1d7   :  { %v1542_v24 = vpop.f32.mrb[0].mxu1 }
 0x1d8   :  { %v2270_v30 = vadd.f32 %v1542_v24, %v2267_v14  ;;  %v438_v15 = vpop.f32.mrb[1].mxu1 }
 0x1d9   :  { %v2273_v35 = vadd.f32 %v2267_v14, %v438_v15  ;;  %v1543_v43 = vpop.f32.mrb[2].mxu1 }
 0x1da   :  { %v503_v16 = vsub.f32 0.0, %v2270_v30  ;;  %v2277_v52 = vadd.f32 %v1543_v43, %v2267_v14  ;;  %v441_v17 = vpop.f32.mrb[3].mxu1 }
 0x1db   :  { %v501_v54 = vsub.f32 0.0, %v2273_v35  ;;  %v2281_v55 = vadd.f32 %v2267_v14, %v441_v17 }
 0x1dc   :  { %v521_v56 = vmul.f32 1.442695, %v503_v16  ;;  %v504_v18 = vsub.f32 0.0, %v2277_v52 }
 0x1dd   :  { %v517_v58 = vmul.f32 1.442695, %v501_v54  ;;  %v502_v59 = vsub.f32 0.0, %v2281_v55 }
 0x1de   :  { %1792 = vpow2.f32 %v521_v56  ;;  %v523_v60 = vmul.f32 1.442695, %v504_v18 }
 0x1df   :  { %1794 = vpow2.f32 %v517_v58  ;;  %v519_v61 = vmul.f32 1.442695, %v502_v59  ;;  %v1546_v63 = vpop.f32.mrb[4].mxu1 }
 0x1e0   :  { %1796 = vpow2.f32 %v523_v60  ;;  %v2286_v0 = vadd.f32 %v1546_v63, %v2267_v14  ;;  %v454_v1 = vpop.f32.mrb[5].mxu1 }
 0x1e1   :  { %1798 = vpow2.f32 %v519_v61  ;;  %v2289_v2 = vadd.f32 %v2267_v14, %v454_v1  ;;  %v1547_v4 = vpop.f32.mrb[6].mxu1 }
 0x1e2   :  { %v507_v5 = vsub.f32 0.0, %v2286_v0  ;;  %v2293_v6 = vadd.f32 %v1547_v4, %v2267_v14  ;;  %v457_v7 = vpop.f32.mrb[7].mxu1 }
 0x1e3   :  { %v505_v20 = vsub.f32 0.0, %v2289_v2  ;;  %v2297_v25 = vadd.f32 %v2267_v14, %v457_v7 }
 0x1e4   :  { %v529_v8 = vmul.f32 1.442695, %v507_v5  ;;  %v508_v22 = vsub.f32 0.0, %v2293_v6 }
 0x1e5   :  { %v525_v28 = vmul.f32 1.442695, %v505_v20  ;;  %v506_v9 = vsub.f32 0.0, %v2297_v25 }
 0x1e6   :  { %1800 = vpow2.f32 %v529_v8  ;;  %v531_v19 = vmul.f32 1.442695, %v508_v22 }
 0x1e7   :  { %1802 = vpow2.f32 %v525_v28  ;;  %v527_v21 = vmul.f32 1.442695, %v506_v9 }
 0x1e8   :  { %v1793_v23 = vpop.eup %1792  ;;  %1804 = vpow2.f32 %v531_v19  ;;  %v1550_v26 = vpop.f32.mrb[8].mxu1 }
 0x1e9   :  { %v1795_v27 = vpop.eup %1794  ;;  %v551_v29 = vadd.f32 1.0, %v1793_v23  ;;  %1806 = vpow2.f32 %v527_v21  ;;  %v2302_v31 = vadd.f32 %v1550_v26, %v2267_v14  ;;  %v470_v32 = vpop.f32.mrb[9].mxu1 }
 0x1ea   :  { %v1797_v33 = vpop.eup %1796  ;;  %v549_v34 = vadd.f32 1.0, %v1795_v27  ;;  %v2305_v10 = vadd.f32 %v2267_v14, %v470_v32  ;;  %v1551_v36 = vpop.f32.mrb[10].mxu1 }
 0x1eb   :  { %v1799_v41 = vpop.eup %1798  ;;  %1808 = vrcp.f32 %v551_v29  ;;  %v552_v37 = vadd.f32 1.0, %v1797_v33  ;;  %v511_v38 = vsub.f32 0.0, %v2302_v31  ;;  %v2309_v44 = vadd.f32 %v1551_v36, %v2267_v14  ;;  %v473_v39 = vpop.f32.mrb[11].mxu1 }
 0x1ec   :  { %1810 = vrcp.f32 %v549_v34  ;;  %v550_v11 = vadd.f32 1.0, %v1799_v41  ;;  %v509_v40 = vsub.f32 0.0, %v2305_v10  ;;  %v2313_v42 = vadd.f32 %v2267_v14, %v473_v39 }
 0x1ed   :  { %1812 = vrcp.f32 %v552_v37  ;;  %v537_v45 = vmul.f32 1.442695, %v511_v38  ;;  %v512_v46 = vsub.f32 0.0, %v2309_v44 }
 0x1ee   :  { %1814 = vrcp.f32 %v550_v11  ;;  %v533_v47 = vmul.f32 1.442695, %v509_v40  ;;  %v510_v48 = vsub.f32 0.0, %v2313_v42 }
 0x1ef   :  { %1816 = vpow2.f32 %v537_v45  ;;  %v539_v12 = vmul.f32 1.442695, %v512_v46 }
 0x1f0   :  { %v1801_v49 = vpop.eup %1800  ;;  %1818 = vpow2.f32 %v533_v47  ;;  %v535_v53 = vmul.f32 1.442695, %v510_v48  ;;  %v1554_v62 = vpop.f32.mrb[12].mxu1 }
 0x1f1   :  { %v1803_v57 = vpop.eup %1802  ;;  %v555_v3 = vadd.f32 1.0, %v1801_v49  ;;  %1820 = vpow2.f32 %v539_v12  ;;  %v2318_v13 = vadd.f32 %v1554_v62, %v2267_v14  ;;  %v486_v50 = vpop.f32.mrb[13].mxu1 }
 0x1f2   :  { %v1805_v51 = vpop.eup %1804  ;;  %v553_v24 = vadd.f32 1.0, %v1803_v57  ;;  %1822 = vpow2.f32 %v535_v53  ;;  %v2321_v15 = vadd.f32 %v2267_v14, %v486_v50  ;;  %v1555_v43 = vpop.f32.mrb[14].mxu1 }
 0x1f3   :  { %v1807_v16 = vpop.eup %1806  ;;  %1824 = vrcp.f32 %v555_v3  ;;  %v556_v17 = vadd.f32 1.0, %v1805_v51  ;;  %v515_v54 = vsub.f32 0.0, %v2318_v13  ;;  %v2325_v56 = vadd.f32 %v1555_v43, %v2267_v14  ;;  %v489_v18 = vpop.f32.mrb[15].mxu1 }
 0x1f4   :  { %1826 = vrcp.f32 %v553_v24  ;;  %v554_v58 = vadd.f32 1.0, %v1807_v16  ;;  %v513_v59 = vsub.f32 0.0, %v2321_v15  ;;  %v2329_v60 = vadd.f32 %v2267_v14, %v489_v18 }
 0x1f5   :  { %v1809_v61 = vpop.eup %1808  ;;  %1828 = vrcp.f32 %v556_v17  ;;  %v545_v63 = vmul.f32 1.442695, %v515_v54  ;;  %v516_v1 = vsub.f32 0.0, %v2325_v56 }
 0x1f6   :  { %v1811_v4 = vpop.eup %1810  ;;  %1830 = vrcp.f32 %v554_v58  ;;  %v541_v5 = vmul.f32 1.442695, %v513_v59  ;;  %v514_v7 = vsub.f32 0.0, %v2329_v60  ;;  %v583_v28 = vmul.f32 %v1809_v61, %v2270_v30 }
 0x1f7   :  { %v1813_v20 = vpop.eup %1812  ;;  %1832 = vpow2.f32 %v545_v63  ;;  %v547_v8 = vmul.f32 1.442695, %v516_v1  ;;  %v581_v23 = vmul.f32 %v1811_v4, %v2273_v35 }
 0x1f8   :  { %v1815_v22 = vpop.eup %1814  ;;  %v584_v9 = vmul.f32 %v1813_v20, %v2277_v52  ;;  %1834 = vpow2.f32 %v541_v5  ;;  %v543_v19 = vmul.f32 1.442695, %v514_v7  ;;  %v1003_v5 = vld [vmem:[%s2645_s1 + $0x20] sm:$0xff]  ;;  %v1004_v7 = vld [vmem:[%s2645_s1 + $0x28] sm:$0xff]  ;;  %v1005_v20 = vld [vmem:[%s2645_s1 + $0x30] sm:$0xff] }
 0x1f9   :  { %v1817_v21 = vpop.eup %1816  ;;  %v582_v26 = vmul.f32 %v1815_v22, %v2281_v55  ;;  %1836 = vpow2.f32 %v547_v8  ;;  %v1006_v8 = vld [vmem:[%s2645_s1 + $0x38] sm:$0xff]  ;;  %v1007_v22 = vld [vmem:[%s2645_s1 + $0x40] sm:$0xff] }
 0x1fa   :  { %v1819_v27 = vpop.eup %1818  ;;  %v598_v29 = vpack.c.bf16 %v584_v9, %v583_v28  ;;  %v559_v32 = vadd.f32 1.0, %v1817_v21  ;;  %1838 = vpow2.f32 %v543_v19  ;;  %v1008_v28 = vld [vmem:[%s2645_s1 + $0x48] sm:$0xff]  ;;  %v1009_v9 = vld [vmem:[%s2645_s1 + $0x50] sm:$0xff]  ;;  %v1010_v19 = vld [vmem:[%s2645_s1 + $0x58] sm:$0xff] }
 0x1fb   :  { %v1821_v33 = vpop.eup %1820  ;;  %v557_v34 = vadd.f32 1.0, %v1819_v27  ;;  %v597_v36 = vpack.c.bf16 %v582_v26, %v581_v23  ;;  %v1011_v21 = vld [vmem:[%s2645_s1 + $0x60] sm:$0xff]  ;;  %v1012_v23 = vld [vmem:[%s2645_s1 + $0x68] sm:$0xff]  ;;  %v1013_v26 = vld [vmem:[%s2645_s1 + $0x70] sm:$0xff] }
 0x1fc   :  { %v1823_v41 = vpop.eup %1822  ;;  %1840 = vrcp.f32 %v559_v32  ;;  %v560_v30 = vadd.f32 1.0, %v1821_v33  ;;  %v1014_v27 = vld [vmem:[%s2645_s1 + $0x78] sm:$0xff] }
 0x1fd   :  { %v1825_v37 = vpop.eup %1824  ;;  %1842 = vrcp.f32 %v557_v34  ;;  %v558_v52 = vadd.f32 1.0, %v1823_v41  ;;  %1572 = vmatprep.mubr.bf16.mxu0 %v597_v36 }
 0x1fe   :  { %v1827_v38 = vpop.eup %1826  ;;  %1844 = vrcp.f32 %v560_v30  ;;  %1573 = vmatmul.mubr.bf16.vlgmr.msra.gmra.mrb[16].mxu0 %v598_v29  ;;  %v587_v39 = vmul.f32 %v1825_v37, %v2286_v0 }
 0x1ff   :  { %v1829_v35 = vpop.eup %1828  ;;  %1846 = vrcp.f32 %v558_v52  ;;  %v585_v45 = vmul.f32 %v1827_v38, %v2289_v2 }
 0x200   :  { %v1831_v55 = vpop.eup %1830  ;;  %v588_v11 = vmul.f32 %v1829_v35, %v2293_v6 }
 0x201   :  { %v1833_v40 = vpop.eup %1832  ;;  %v586_v46 = vmul.f32 %v1831_v55, %v2297_v25 }
 0x202   :  { %v1835_v47 = vpop.eup %1834  ;;  %v563_v48 = vadd.f32 1.0, %v1833_v40  ;;  %v600_v12 = vpack.c.bf16 %v588_v11, %v587_v39 }
 0x203   :  { %v1837_v49 = vpop.eup %1836  ;;  %v561_v53 = vadd.f32 1.0, %v1835_v47  ;;  %v599_v62 = vpack.c.bf16 %v586_v46, %v585_v45 }
 0x204   :  { %v1839_v57 = vpop.eup %1838  ;;  %1848 = vrcp.f32 %v563_v48  ;;  %v564_v3 = vadd.f32 1.0, %v1837_v49 }
 0x205   :  { %1850 = vrcp.f32 %v561_v53  ;;  %v562_v50 = vadd.f32 1.0, %v1839_v57  ;;  %1576 = vmatprep.mubr.bf16.mxu0 %v599_v62 }
 0x206   :  { %v1841_v0 = vpop.eup %1840  ;;  %1852 = vrcp.f32 %v564_v3  ;;  %1577 = vmatmul.mubr.bf16.gmra.mrb[20].mxu0 %v600_v12 }
 0x207   :  { %v1843_v6 = vpop.eup %1842  ;;  %1854 = vrcp.f32 %v562_v50  ;;  %v591_v25 = vmul.f32 %v1841_v0, %v2302_v31 }
 0x208   :  { %v1845_v2 = vpop.eup %1844  ;;  %v589_v43 = vmul.f32 %v1843_v6, %v2305_v10 }
 0x209   :  { %v1847_v51 = vpop.eup %1846  ;;  %v592_v24 = vmul.f32 %v1845_v2, %v2309_v44 }
 0x20a   :  { %v590_v16 = vmul.f32 %v1847_v51, %v2313_v42  ;;  %v1015_v42 = vld [vmem:[%s2650_s6] sm:$0xff] }
 0x20b   :  { %v602_v17 = vpack.c.bf16 %v592_v24, %v591_v25  ;;  %1620 = vmatprep.subr.mxu0 %v1015_v42 }
 0x20c   :  { %v601_v54 = vpack.c.bf16 %v590_v16, %v589_v43  ;;  %1621 = vmatpush3.msra.mxu0 %v1015_v42 }
 0x20e   :  { %v1849_v18 = vpop.eup %1848  ;;  %1580 = vmatprep.mubr.bf16.mxu0 %v601_v54 }
 0x20f   :  { %v1851_v58 = vpop.eup %1850  ;;  %1581 = vmatmul.mubr.bf16.gmra.mrb[24].mxu0 %v602_v17  ;;  %v595_v63 = vmul.f32 %v1849_v18, %v2318_v13  ;;  %v999_v13 = vld [vmem:[%s2645_s1] sm:$0xff] }
 0x210   :  { %v1853_v59 = vpop.eup %1852  ;;  %v593_v31 = vmul.f32 %v1851_v58, %v2321_v15  ;;  %v1000_v15 = vld [vmem:[%s2645_s1 + $0x8] sm:$0xff] }
 0x211   :  { %v1855_v61 = vpop.eup %1854  ;;  %v596_v1 = vmul.f32 %v1853_v59, %v2325_v56  ;;  %v1001_v56 = vld [vmem:[%s2645_s1 + $0x10] sm:$0xff] }
 0x212   :  { %v594_v44 = vmul.f32 %v1855_v61, %v2329_v60  ;;  %v1002_v60 = vld [vmem:[%s2645_s1 + $0x18] sm:$0xff]  ;;  %s2012_s1 = smov [#allocation2]  }
 0x213   :  { %v604_v4 = vpack.c.bf16 %v596_v1, %v595_v63  ;;  %s1358_s17 = sshll.u32 %s2012_s1, 4  ;;  %s1359_s17 = int_to_ptr.vmem [resolvable:$true] %s1358_s17 }
 0x214   :  { %v603_v10 = vpack.c.bf16 %v594_v44, %v593_v31  ;;  %s1984_s18 = scalar_lea.vmem %s1359_s17, 16  ;;  %s1988_s19 = scalar_lea.vmem %s1359_s17, 32 }
 0x215   :  { %p1985_p0 = scmp.ne.s32.totalorder %s1359_s17, %s1984_s18  ;;  %p1989_p1 = scmp.lt.s32.totalorder %s1359_s17, %s1359_s17 }
 0x216   :  { %1584 = vmatprep.mubr.bf16.mxu0 %v603_v10  ;;  %p1990_p2 = scmp.lt.s32.totalorder %s1988_s19, %s1984_s18 }
 0x217   :  { %1585 = vmatmul.mubr.bf16.gmra.mrb[28].mxu0 %v604_v4 }
 0x218   :  { %1622 = vmatprep.mubr.msk.f32.mxu0 %vm1016_vm1, %v999_v13  ;;  %p1991_p3 = por %p1990_p2, %p1989_p1 }
 0x21a   :  { %p1992_p4 = pnand %p1991_p3, %p1985_p0 }
 0x21f   :  { %1623 = vmatmul.mubr.msk.f32.vlgmr.msra.gmra.mrb[32].mxu0 %vm1016_vm1, %v1000_v15 }
 0x220   :  { %1625 = vmatprep.mubr.msk.f32.mxu0 %vm1016_vm1, %v1001_v56 }
 0x223   :  { %1626 = vmatmul.mubr.msk.f32.gmra.mrb[34].mxu0 %vm1016_vm1, %v1002_v60 }
 0x224   :  { %1628 = vmatprep.mubr.msk.f32.mxu0 %vm1016_vm1, %v1003_v5 }
 0x227   :  { %1629 = vmatmul.mubr.msk.f32.gmra.mrb[36].mxu0 %vm1016_vm1, %v1004_v7 }
 0x228   :  { %1631 = vmatprep.mubr.msk.f32.mxu0 %vm1016_vm1, %v1005_v20 }
 0x22b   :  { %1632 = vmatmul.mubr.msk.f32.gmra.mrb[38].mxu0 %vm1016_vm1, %v1006_v8 }
 0x22c   :  { %1634 = vmatprep.mubr.msk.f32.mxu0 %vm1016_vm1, %v1007_v22 }
 0x22f   :  { %1635 = vmatmul.mubr.msk.f32.gmra.mrb[40].mxu0 %vm1016_vm1, %v1008_v28 }
 0x230   :  { %1637 = vmatprep.mubr.msk.f32.mxu0 %vm1016_vm1, %v1009_v9 }
 0x233   :  { %1638 = vmatmul.mubr.msk.f32.gmra.mrb[42].mxu0 %vm1016_vm1, %v1010_v19 }
 0x234   :  { %1640 = vmatprep.mubr.msk.f32.mxu0 %vm1016_vm1, %v1011_v21 }
 0x237   :  { %1641 = vmatmul.mubr.msk.f32.gmra.mrb[44].mxu0 %vm1016_vm1, %v1012_v23 }
 0x238   :  { %1643 = vmatprep.mubr.msk.f32.mxu0 %vm1016_vm1, %v1013_v26 }
 0x23b   :  { %1644 = vmatmul.mubr.msk.f32.gmra.mrb[46].mxu0 %vm1016_vm1, %v1014_v27 }
 0x2d1   :  { %v1574_v29 = vpop.f32.mrb[16].mxu0 }
 0x2d2   :  { %v2417_v32 = vadd.f32 %v1574_v29, %v2267_v14  ;;  %v639_v33 = vpop.f32.mrb[17].mxu0 }
 0x2d3   :  { %v2420_v34 = vadd.f32 %v2267_v14, %v639_v33  ;;  %v1575_v36 = vpop.f32.mrb[18].mxu0 }
 0x2d4   :  { %v704_v41 = vsub.f32 0.0, %v2417_v32  ;;  %v2424_v30 = vadd.f32 %v1575_v36, %v2267_v14  ;;  %v642_v37 = vpop.f32.mrb[19].mxu0 }
 0x2d5   :  { %v702_v52 = vsub.f32 0.0, %v2420_v34  ;;  %v2428_v38 = vadd.f32 %v2267_v14, %v642_v37 }
 0x2d6   :  { %v722_v35 = vmul.f32 1.442695, %v704_v41  ;;  %v705_v55 = vsub.f32 0.0, %v2424_v30 }
 0x2d7   :  { %v718_v39 = vmul.f32 1.442695, %v702_v52  ;;  %v703_v11 = vsub.f32 0.0, %v2428_v38 }
 0x2d8   :  { %1856 = vpow2.f32 %v722_v35  ;;  %v724_v40 = vmul.f32 1.442695, %v705_v55 }
 0x2d9   :  { %1858 = vpow2.f32 %v718_v39  ;;  %v720_v45 = vmul.f32 1.442695, %v703_v11  ;;  %v1578_v46 = vpop.f32.mrb[20].mxu0 }
 0x2da   :  { %1860 = vpow2.f32 %v724_v40  ;;  %v2433_v47 = vadd.f32 %v1578_v46, %v2267_v14  ;;  %v655_v48 = vpop.f32.mrb[21].mxu0 }
 0x2db   :  { %1862 = vpow2.f32 %v720_v45  ;;  %v2436_v12 = vadd.f32 %v2267_v14, %v655_v48  ;;  %v1579_v49 = vpop.f32.mrb[22].mxu0 }
 0x2dc   :  { %v708_v53 = vsub.f32 0.0, %v2433_v47  ;;  %v2440_v62 = vadd.f32 %v1579_v49, %v2267_v14  ;;  %v658_v57 = vpop.f32.mrb[23].mxu0 }
 0x2dd   :  { %v706_v3 = vsub.f32 0.0, %v2436_v12  ;;  %v2444_v50 = vadd.f32 %v2267_v14, %v658_v57 }
 0x2de   :  { %v730_v0 = vmul.f32 1.442695, %v708_v53  ;;  %v709_v6 = vsub.f32 0.0, %v2440_v62 }
 0x2df   :  { %v726_v2 = vmul.f32 1.442695, %v706_v3  ;;  %v707_v51 = vsub.f32 0.0, %v2444_v50 }
 0x2e0   :  { %1864 = vpow2.f32 %v730_v0  ;;  %v732_v25 = vmul.f32 1.442695, %v709_v6 }
 0x2e1   :  { %1866 = vpow2.f32 %v726_v2  ;;  %v728_v24 = vmul.f32 1.442695, %v707_v51 }
 0x2e2   :  { %v1857_v43 = vpop.eup %1856  ;;  %1868 = vpow2.f32 %v732_v25  ;;  %v1582_v16 = vpop.f32.mrb[24].mxu0 }
 0x2e3   :  { %v1859_v17 = vpop.eup %1858  ;;  %v752_v54 = vadd.f32 1.0, %v1857_v43  ;;  %1870 = vpow2.f32 %v728_v24  ;;  %v2449_v18 = vadd.f32 %v1582_v16, %v2267_v14  ;;  %v671_v58 = vpop.f32.mrb[25].mxu0 }
 0x2e4   :  { %v1861_v59 = vpop.eup %1860  ;;  %v750_v61 = vadd.f32 1.0, %v1859_v17  ;;  %v2452_v63 = vadd.f32 %v2267_v14, %v671_v58  ;;  %v1583_v1 = vpop.f32.mrb[26].mxu0 }
 0x2e5   :  { %v1863_v31 = vpop.eup %1862  ;;  %1872 = vrcp.f32 %v752_v54  ;;  %v753_v44 = vadd.f32 1.0, %v1861_v59  ;;  %v712_v4 = vsub.f32 0.0, %v2449_v18  ;;  %v2456_v10 = vadd.f32 %v1583_v1, %v2267_v14  ;;  %v674_v42 = vpop.f32.mrb[27].mxu0 }
 0x2e6   :  { %1874 = vrcp.f32 %v750_v61  ;;  %v751_v13 = vadd.f32 1.0, %v1863_v31  ;;  %v710_v15 = vsub.f32 0.0, %v2452_v63  ;;  %v2460_v56 = vadd.f32 %v2267_v14, %v674_v42 }
 0x2e7   :  { %1876 = vrcp.f32 %v753_v44  ;;  %v738_v60 = vmul.f32 1.442695, %v712_v4  ;;  %v713_v5 = vsub.f32 0.0, %v2456_v10 }
 0x2e8   :  { %1878 = vrcp.f32 %v751_v13  ;;  %v734_v7 = vmul.f32 1.442695, %v710_v15  ;;  %v711_v20 = vsub.f32 0.0, %v2460_v56 }
 0x2e9   :  { %1880 = vpow2.f32 %v738_v60  ;;  %v740_v8 = vmul.f32 1.442695, %v713_v5 }
 0x2ea   :  { %v1865_v22 = vpop.eup %1864  ;;  %1882 = vpow2.f32 %v734_v7  ;;  %v736_v28 = vmul.f32 1.442695, %v711_v20  ;;  %v1586_v9 = vpop.f32.mrb[28].mxu0 }
 0x2eb   :  { %v1867_v19 = vpop.eup %1866  ;;  %v756_v21 = vadd.f32 1.0, %v1865_v22  ;;  %1884 = vpow2.f32 %v740_v8  ;;  %v2465_v23 = vadd.f32 %v1586_v9, %v2267_v14  ;;  %v687_v26 = vpop.f32.mrb[29].mxu0 }
 0x2ec   :  { %v1869_v27 = vpop.eup %1868  ;;  %v754_v29 = vadd.f32 1.0, %v1867_v19  ;;  %1886 = vpow2.f32 %v736_v28  ;;  %v2468_v33 = vadd.f32 %v2267_v14, %v687_v26  ;;  %v1587_v36 = vpop.f32.mrb[30].mxu0 }
 0x2ed   :  { %v1871_v41 = vpop.eup %1870  ;;  %1888 = vrcp.f32 %v756_v21  ;;  %v757_v37 = vadd.f32 1.0, %v1869_v27  ;;  %v716_v52 = vsub.f32 0.0, %v2465_v23  ;;  %v2472_v35 = vadd.f32 %v1587_v36, %v2267_v14  ;;  %v690_v55 = vpop.f32.mrb[31].mxu0 }
 0x2ee   :  { %1890 = vrcp.f32 %v754_v29  ;;  %v755_v39 = vadd.f32 1.0, %v1871_v41  ;;  %v714_v11 = vsub.f32 0.0, %v2468_v33  ;;  %v2476_v40 = vadd.f32 %v2267_v14, %v690_v55 }
 0x2ef   :  { %v1873_v45 = vpop.eup %1872  ;;  %1892 = vrcp.f32 %v757_v37  ;;  %v746_v46 = vmul.f32 1.442695, %v716_v52  ;;  %v717_v48 = vsub.f32 0.0, %v2472_v35 }
 0x2f0   :  { %v1875_v49 = vpop.eup %1874  ;;  %1894 = vrcp.f32 %v755_v39  ;;  %v742_v53 = vmul.f32 1.442695, %v714_v11  ;;  %v715_v57 = vsub.f32 0.0, %v2476_v40  ;;  %v784_v2 = vmul.f32 %v1873_v45, %v2417_v32 }
 0x2f1   :  { %v1877_v3 = vpop.eup %1876  ;;  %1896 = vpow2.f32 %v746_v46  ;;  %v748_v0 = vmul.f32 1.442695, %v717_v48  ;;  %v782_v43 = vmul.f32 %v1875_v49, %v2420_v34 }
 0x2f2   :  { %v1879_v6 = vpop.eup %1878  ;;  %v785_v51 = vmul.f32 %v1877_v3, %v2424_v30  ;;  %1898 = vpow2.f32 %v742_v53  ;;  %v744_v25 = vmul.f32 1.442695, %v715_v57 }
 0x2f3   :  { %v1881_v24 = vpop.eup %1880  ;;  %v783_v16 = vmul.f32 %v1879_v6, %v2428_v38  ;;  %1900 = vpow2.f32 %v748_v0  ;;  %v2008_v6 = vmov 0.0|0.0  }
 0x2f4   :  { %v1883_v17 = vpop.eup %1882  ;;  %v799_v54 = vpack.c.bf16 %v785_v51, %v784_v2  ;;  %v760_v58 = vadd.f32 1.0, %v1881_v24  ;;  %1902 = vpow2.f32 %v744_v25  ;;  %1681 = vmatprep.subr.bf16.mxu1 %v2008_v6 }
 0x2f5   :  { %v1885_v59 = vpop.eup %1884  ;;  %v758_v61 = vadd.f32 1.0, %v1883_v17  ;;  %v798_v1 = vpack.c.bf16 %v783_v16, %v782_v43 }
 0x2f6   :  { %v1887_v31 = vpop.eup %1886  ;;  %1904 = vrcp.f32 %v760_v58  ;;  %v761_v32 = vadd.f32 1.0, %v1885_v59 }
 0x2f7   :  { %v1889_v44 = vpop.eup %1888  ;;  %1906 = vrcp.f32 %v758_v61  ;;  %v759_v30 = vadd.f32 1.0, %v1887_v31  ;;  %1604 = vmatprep.mubr.bf16.mxu1 %v798_v1 }
 0x2f8   :  { %v1891_v4 = vpop.eup %1890  ;;  %1908 = vrcp.f32 %v761_v32  ;;  %1605 = vmatmul.mubr.bf16.vlgmr.msra.gmra.mrb[16].mxu1 %v799_v54  ;;  %v788_v42 = vmul.f32 %v1889_v44, %v2433_v47  ;;  %v2010_v54 = vmov 0.0  }
 0x2f9   :  { %v1893_v34 = vpop.eup %1892  ;;  %1910 = vrcp.f32 %v759_v30  ;;  %v786_v60 = vmul.f32 %v1891_v4, %v2436_v12 }
 0x2fa   :  { %v1895_v38 = vpop.eup %1894  ;;  %v789_v13 = vmul.f32 %v1893_v34, %v2440_v62 }
 0x2fb   :  { %v1897_v15 = vpop.eup %1896  ;;  %v787_v5 = vmul.f32 %v1895_v38, %v2444_v50 }
 0x2fc   :  { %v1899_v7 = vpop.eup %1898  ;;  %v764_v20 = vadd.f32 1.0, %v1897_v15  ;;  %v801_v8 = vpack.c.bf16 %v789_v13, %v788_v42 }
 0x2fd   :  { %v1901_v22 = vpop.eup %1900  ;;  %v762_v28 = vadd.f32 1.0, %v1899_v7  ;;  %v800_v9 = vpack.c.bf16 %v787_v5, %v786_v60 }
 0x2fe   :  { %v1903_v19 = vpop.eup %1902  ;;  %1912 = vrcp.f32 %v764_v20  ;;  %v765_v21 = vadd.f32 1.0, %v1901_v22 }
 0x2ff   :  { %1914 = vrcp.f32 %v762_v28  ;;  %v763_v26 = vadd.f32 1.0, %v1903_v19  ;;  %1608 = vmatprep.mubr.bf16.mxu1 %v800_v9 }
 0x300   :  { %v1905_v47 = vpop.eup %1904  ;;  %1916 = vrcp.f32 %v765_v21  ;;  %1609 = vmatmul.mubr.bf16.gmra.mrb[20].mxu1 %v801_v8 }
 0x301   :  { %v1907_v62 = vpop.eup %1906  ;;  %1918 = vrcp.f32 %v763_v26  ;;  %v792_v50 = vmul.f32 %v1905_v47, %v2449_v18 }
 0x302   :  { %v1909_v12 = vpop.eup %1908  ;;  %v790_v36 = vmul.f32 %v1907_v62, %v2452_v63 }
 0x303   :  { %v1911_v27 = vpop.eup %1910  ;;  %v793_v29 = vmul.f32 %v1909_v12, %v2456_v10 }
 0x304   :  { %v791_v41 = vmul.f32 %v1911_v27, %v2460_v56  ;;  %v2496_v56 = vpop.f32.mrb[32].mxu0 }
 0x305   :  { %v803_v37 = vpack.c.bf16 %v793_v29, %v792_v50  ;;  %v2498_v53 = vpop.f32.mrb[33].mxu0 }
 0x306   :  { %v802_v52 = vpack.c.bf16 %v791_v41, %v790_v36  ;;  %v2500_v57 = vpop.f32.mrb[34].mxu0 }
 0x307   :  { %v2502_v3 = vpop.f32.mrb[35].mxu0 }
 0x308   :  { %v1913_v55 = vpop.eup %1912  ;;  %1612 = vmatprep.mubr.bf16.mxu1 %v802_v52  ;;  %v2504_v0 = vpop.f32.mrb[36].mxu0 }
 0x309   :  { %v1915_v39 = vpop.eup %1914  ;;  %1613 = vmatmul.mubr.bf16.gmra.mrb[24].mxu1 %v803_v37  ;;  %v796_v46 = vmul.f32 %v1913_v55, %v2465_v23  ;;  %v2506_v23 = vpop.f32.mrb[37].mxu0 }
 0x30a   :  { %v1917_v11 = vpop.eup %1916  ;;  %v794_v18 = vmul.f32 %v1915_v39, %v2468_v33 }
 0x30b   :  { %v1919_v45 = vpop.eup %1918  ;;  %v797_v48 = vmul.f32 %v1917_v11, %v2472_v35  ;;  %v2508_v35 = vpop.f32.mrb[38].mxu0 }
 0x30c   :  { %v795_v10 = vmul.f32 %v1919_v45, %v2476_v40  ;;  %v2510_v33 = vpop.f32.mrb[39].mxu0 }
 0x30d   :  { %v805_v49 = vpack.c.bf16 %v797_v48, %v796_v46  ;;  %v2512_v40 = vpop.f32.mrb[40].mxu0 }
 0x30e   :  { %v804_v63 = vpack.c.bf16 %v795_v10, %v794_v18  ;;  %v2515_v2 = vpop.f32.mrb[41].mxu0 }
 0x30f   :  { %v2517_v51 = vpop.f32.mrb[42].mxu0 }
 0x310   :  { %1616 = vmatprep.mubr.bf16.mxu1 %v804_v63  ;;  %v2519_v25 = vpop.f32.mrb[43].mxu0 }
 0x311   :  { %1617 = vmatmul.mubr.bf16.gmra.mrb[28].mxu1 %v805_v49  ;;  %v2521_v24 = vpop.f32.mrb[44].mxu0 }
 0x312   :  { %v2523_v43 = vpop.f32.mrb[45].mxu0  ;;  %1678 = vmatprep.mubr.msk.f32.mxu1 %vm2009_vm2, %v2010_v54 }
 0x313   :  { %v2525_v16 = vpop.f32.mrb[46].mxu0 }
 0x314   :  { %v2527_v17 = vpop.f32.mrb[47].mxu0 }
 0x3cb   :  { %v1606_v58 = vpop.f32.mrb[16].mxu1 }
 0x3cc   :  { %v2530_v59 = vadd.f32 %v1606_v58, %v2267_v14  ;;  %v840_v61 = vpop.f32.mrb[17].mxu1 }
 0x3cd   :  { %v2533_v1 = vadd.f32 %v2267_v14, %v840_v61  ;;  %v1607_v31 = vpop.f32.mrb[18].mxu1 }
 0x3ce   :  { %v905_v32 = vsub.f32 0.0, %v2530_v59  ;;  %v2537_v44 = vadd.f32 %v1607_v31, %v2267_v14  ;;  %v843_v30 = vpop.f32.mrb[19].mxu1 }
 0x3cf   :  { %v903_v4 = vsub.f32 0.0, %v2533_v1  ;;  %v2541_v34 = vadd.f32 %v2267_v14, %v843_v30 }
 0x3d0   :  { %v923_v38 = vmul.f32 1.442695, %v905_v32  ;;  %v906_v42 = vsub.f32 0.0, %v2537_v44 }
 0x3d1   :  { %v919_v13 = vmul.f32 1.442695, %v903_v4  ;;  %v904_v15 = vsub.f32 0.0, %v2541_v34 }
 0x3d2   :  { %1920 = vpow2.f32 %v923_v38  ;;  %v925_v60 = vmul.f32 1.442695, %v906_v42 }
 0x3d3   :  { %1922 = vpow2.f32 %v919_v13  ;;  %v921_v5 = vmul.f32 1.442695, %v904_v15  ;;  %v1610_v7 = vpop.f32.mrb[20].mxu1 }
 0x3d4   :  { %1924 = vpow2.f32 %v925_v60  ;;  %v2546_v20 = vadd.f32 %v1610_v7, %v2267_v14  ;;  %v856_v8 = vpop.f32.mrb[21].mxu1 }
 0x3d5   :  { %1926 = vpow2.f32 %v921_v5  ;;  %v2549_v22 = vadd.f32 %v2267_v14, %v856_v8  ;;  %v1611_v28 = vpop.f32.mrb[22].mxu1 }
 0x3d6   :  { %v909_v9 = vsub.f32 0.0, %v2546_v20  ;;  %v2553_v19 = vadd.f32 %v1611_v28, %v2267_v14  ;;  %v859_v21 = vpop.f32.mrb[23].mxu1 }
 0x3d7   :  { %v907_v26 = vsub.f32 0.0, %v2549_v22  ;;  %v2557_v47 = vadd.f32 %v2267_v14, %v859_v21 }
 0x3d8   :  { %v931_v62 = vmul.f32 1.442695, %v909_v9  ;;  %v910_v12 = vsub.f32 0.0, %v2553_v19 }
 0x3d9   :  { %v927_v27 = vmul.f32 1.442695, %v907_v26  ;;  %v908_v50 = vsub.f32 0.0, %v2557_v47 }
 0x3da   :  { %1928 = vpow2.f32 %v931_v62  ;;  %v933_v29 = vmul.f32 1.442695, %v910_v12 }
 0x3db   :  { %1930 = vpow2.f32 %v927_v27  ;;  %v929_v36 = vmul.f32 1.442695, %v908_v50 }
 0x3dc   :  { %v1921_v41 = vpop.eup %1920  ;;  %1932 = vpow2.f32 %v933_v29  ;;  %v1614_v37 = vpop.f32.mrb[24].mxu1 }
 0x3dd   :  { %v1923_v52 = vpop.eup %1922  ;;  %v953_v55 = vadd.f32 1.0, %v1921_v41  ;;  %1934 = vpow2.f32 %v929_v36  ;;  %v2562_v39 = vadd.f32 %v1614_v37, %v2267_v14  ;;  %v872_v11 = vpop.f32.mrb[25].mxu1 }
 0x3de   :  { %v1925_v45 = vpop.eup %1924  ;;  %v951_v46 = vadd.f32 1.0, %v1923_v52  ;;  %v2565_v48 = vadd.f32 %v2267_v14, %v872_v11  ;;  %v1615_v18 = vpop.f32.mrb[26].mxu1 }
 0x3df   :  { %v1927_v10 = vpop.eup %1926  ;;  %1936 = vrcp.f32 %v953_v55  ;;  %v954_v49 = vadd.f32 1.0, %v1925_v45  ;;  %v913_v63 = vsub.f32 0.0, %v2562_v39  ;;  %v2569_v54 = vadd.f32 %v1615_v18, %v2267_v14  ;;  %v875_v58 = vpop.f32.mrb[27].mxu1 }
 0x3e0   :  { %1938 = vrcp.f32 %v951_v46  ;;  %v952_v61 = vadd.f32 1.0, %v1927_v10  ;;  %v911_v31 = vsub.f32 0.0, %v2565_v48  ;;  %v2573_v32 = vadd.f32 %v2267_v14, %v875_v58 }
 0x3e1   :  { %1940 = vrcp.f32 %v954_v49  ;;  %v939_v30 = vmul.f32 1.442695, %v913_v63  ;;  %v914_v4 = vsub.f32 0.0, %v2569_v54 }
 0x3e2   :  { %1942 = vrcp.f32 %v952_v61  ;;  %v935_v38 = vmul.f32 1.442695, %v911_v31  ;;  %v912_v42 = vsub.f32 0.0, %v2573_v32 }
 0x3e3   :  { %1944 = vpow2.f32 %v939_v30  ;;  %v941_v13 = vmul.f32 1.442695, %v914_v4 }
 0x3e4   :  { %v1929_v15 = vpop.eup %1928  ;;  %1946 = vpow2.f32 %v935_v38  ;;  %v937_v60 = vmul.f32 1.442695, %v912_v42  ;;  %v1618_v5 = vpop.f32.mrb[28].mxu1 }
 0x3e5   :  { %v1931_v7 = vpop.eup %1930  ;;  %v957_v8 = vadd.f32 1.0, %v1929_v15  ;;  %1948 = vpow2.f32 %v941_v13  ;;  %v2578_v28 = vadd.f32 %v1618_v5, %v2267_v14  ;;  %v888_v9 = vpop.f32.mrb[29].mxu1 }
 0x3e6   :  { %v1933_v21 = vpop.eup %1932  ;;  %v955_v26 = vadd.f32 1.0, %v1931_v7  ;;  %1950 = vpow2.f32 %v937_v60  ;;  %v2581_v62 = vadd.f32 %v2267_v14, %v888_v9  ;;  %v1619_v12 = vpop.f32.mrb[30].mxu1 }
 0x3e7   :  { %v1935_v27 = vpop.eup %1934  ;;  %1952 = vrcp.f32 %v957_v8  ;;  %v958_v50 = vadd.f32 1.0, %v1933_v21  ;;  %v917_v29 = vsub.f32 0.0, %v2578_v28  ;;  %v2585_v36 = vadd.f32 %v1619_v12, %v2267_v14  ;;  %v891_v41 = vpop.f32.mrb[31].mxu1 }
 0x3e8   :  { %1954 = vrcp.f32 %v955_v26  ;;  %v956_v37 = vadd.f32 1.0, %v1935_v27  ;;  %v915_v52 = vsub.f32 0.0, %v2581_v62  ;;  %v2589_v55 = vadd.f32 %v2267_v14, %v891_v41 }
 0x3e9   :  { %v1937_v11 = vpop.eup %1936  ;;  %1956 = vrcp.f32 %v958_v50  ;;  %v947_v45 = vmul.f32 1.442695, %v917_v29  ;;  %v918_v46 = vsub.f32 0.0, %v2585_v36 }
 0x3ea   :  { %v1939_v18 = vpop.eup %1938  ;;  %1958 = vrcp.f32 %v956_v37  ;;  %v943_v10 = vmul.f32 1.442695, %v915_v52  ;;  %v916_v49 = vsub.f32 0.0, %v2589_v55  ;;  %v985_v63 = vmul.f32 %v1937_v11, %v2530_v59 }
 0x3eb   :  { %v1941_v58 = vpop.eup %1940  ;;  %1960 = vpow2.f32 %v947_v45  ;;  %v949_v61 = vmul.f32 1.442695, %v918_v46  ;;  %v983_v31 = vmul.f32 %v1939_v18, %v2533_v1 }
 0x3ec   :  { %v1943_v30 = vpop.eup %1942  ;;  %1962 = vpow2.f32 %v943_v10  ;;  %v945_v14 = vmul.f32 1.442695, %v916_v49  ;;  %v986_v4 = vmul.f32 %v1941_v58, %v2537_v44  ;;  %v1212_v38 = vsub.f32 %v985_v63, %v2502_v3 }
 0x3ed   :  { %v1945_v42 = vpop.eup %1944  ;;  %1964 = vpow2.f32 %v949_v61  ;;  %v984_v13 = vmul.f32 %v1943_v30, %v2541_v34  ;;  %v1210_v15 = vsub.f32 %v983_v31, %v2498_v53 }
 0x3ee   :  { %v1947_v60 = vpop.eup %1946  ;;  %v961_v59 = vadd.f32 1.0, %v1945_v42  ;;  %1966 = vpow2.f32 %v945_v14  ;;  %v1213_v5 = vsub.f32 %v986_v4, %v2500_v57  ;;  %v1228_v7 = vmul.f32 %v1212_v38, %v1212_v38 }
 0x3ef   :  { %v1949_v1 = vpop.eup %1948  ;;  %v959_v8 = vadd.f32 1.0, %v1947_v60  ;;  %v1211_v9 = vsub.f32 %v984_v13, %v2496_v56  ;;  %v1226_v21 = vmul.f32 %v1210_v15, %v1210_v15 }
 0x3f0   :  { %v1951_v44 = vpop.eup %1950  ;;  %1968 = vrcp.f32 %v961_v59  ;;  %v962_v3 = vadd.f32 1.0, %v1949_v1  ;;  %v1229_v26 = vmul.f32 %v1213_v5, %v1213_v5  ;;  %v1244_v12 = vmax.f32 %v1228_v7, 1e-12 }
 0x3f1   :  { %v1953_v27 = vpop.eup %1952  ;;  %1970 = vrcp.f32 %v959_v8  ;;  %v960_v34 = vadd.f32 1.0, %v1951_v44  ;;  %v1227_v53 = vmul.f32 %v1211_v9, %v1211_v9  ;;  %v1242_v50 = vmax.f32 %v1226_v21, 1e-12 }
 0x3f2   :  { %v1955_v29 = vpop.eup %1954  ;;  %1972 = vrcp.f32 %v962_v3  ;;  %v1245_v41 = vmax.f32 %v1229_v26, 1e-12  ;;  %v989_v57 = vmul.f32 %v1953_v27, %v2546_v20  ;;  %v1260_v46 = vmin.f32 %v1244_v12, 1e+12 }
 0x3f3   :  { %v1957_v37 = vpop.eup %1956  ;;  %1974 = vrcp.f32 %v960_v34  ;;  %v1243_v52 = vmax.f32 %v1227_v53, 1e-12  ;;  %v987_v56 = vmul.f32 %v1955_v29, %v2549_v22  ;;  %v1258_v58 = vmin.f32 %v1242_v50, 1e+12 }
 0x3f4   :  { %v1959_v11 = vpop.eup %1958  ;;  %v1261_v45 = vmin.f32 %v1245_v41, 1e+12  ;;  %v990_v18 = vmul.f32 %v1957_v37, %v2553_v19  ;;  %v1216_v10 = vsub.f32 %v989_v57, %v2510_v33 }
 0x3f5   :  { %v1961_v49 = vpop.eup %1960  ;;  %v1259_v63 = vmin.f32 %v1243_v52, 1e+12  ;;  %v988_v61 = vmul.f32 %v1959_v11, %v2557_v47  ;;  %v1214_v31 = vsub.f32 %v987_v56, %v2506_v23 }
 0x3f6   :  { %v1963_v20 = vpop.eup %1962  ;;  %v965_v30 = vadd.f32 1.0, %v1961_v49  ;;  %v1685_v14 = vpack.c.bf16 %v1261_v45, %v1260_v46  ;;  %v1217_v4 = vsub.f32 %v990_v18, %v2508_v35  ;;  %v1232_v22 = vmul.f32 %v1216_v10, %v1216_v10 }
 0x3f7   :  { %v1965_v38 = vpop.eup %1964  ;;  %v963_v42 = vadd.f32 1.0, %v1963_v20  ;;  %v1682_v13 = vpack.c.bf16 %v1259_v63, %v1258_v58  ;;  %v1215_v19 = vsub.f32 %v988_v61, %v2504_v0  ;;  %v1230_v15 = vmul.f32 %v1214_v31, %v1214_v31 }
 0x3f8   :  { %v1967_v33 = vpop.eup %1966  ;;  %1976 = vrcp.f32 %v965_v30  ;;  %v966_v60 = vadd.f32 1.0, %v1965_v38  ;;  %v1233_v59 = vmul.f32 %v1217_v4, %v1217_v4  ;;  %v1248_v5 = vmax.f32 %v1232_v22, 1e-12 }
 0x3f9   :  { %1978 = vrcp.f32 %v963_v42  ;;  %v964_v47 = vadd.f32 1.0, %v1967_v33  ;;  %v1231_v23 = vmul.f32 %v1215_v19, %v1215_v19  ;;  %v1246_v7 = vmax.f32 %v1230_v15, 1e-12  ;;  %1683 = vmatpush3.bf16.xpose.msra.mxu1 %v1682_v13 }
 0x3fa   :  { %v1969_v1 = vpop.eup %1968  ;;  %1980 = vrcp.f32 %v966_v60  ;;  %v1249_v35 = vmax.f32 %v1233_v59, 1e-12  ;;  %1684 = vmatprep.subr.bf16.mxu1 %v2008_v6  ;;  %v1264_v3 = vmin.f32 %v1248_v5, 1e+12 }
 0x3fb   :  { %v1971_v8 = vpop.eup %1970  ;;  %1982 = vrcp.f32 %v964_v47  ;;  %v1247_v9 = vmax.f32 %v1231_v23, 1e-12  ;;  %v993_v0 = vmul.f32 %v1969_v1, %v2562_v39  ;;  %v1262_v34 = vmin.f32 %v1246_v7, 1e+12 }
 0x3fc   :  { %v1973_v21 = vpop.eup %1972  ;;  %v1265_v44 = vmin.f32 %v1249_v35, 1e+12  ;;  %v991_v26 = vmul.f32 %v1971_v8, %v2565_v48  ;;  %v2011_v7 = vmov 1.0  }
 0x3fd   :  { %v1975_v12 = vpop.eup %1974  ;;  %v1263_v27 = vmin.f32 %v1247_v9, 1e+12  ;;  %v994_v53 = vmul.f32 %v1973_v21, %v2569_v54  ;;  %v1220_v50 = vsub.f32 %v993_v0, %v2519_v25 }
 0x3fe   :  { %v1691_v29 = vpack.c.bf16 %v1265_v44, %v1264_v3  ;;  %v992_v41 = vmul.f32 %v1975_v12, %v2573_v32  ;;  %v1218_v57 = vsub.f32 %v991_v26, %v2515_v2 }
 0x3ff   :  { %v1688_v37 = vpack.c.bf16 %v1263_v27, %v1262_v34  ;;  %v1221_v39 = vsub.f32 %v994_v53, %v2517_v51  ;;  %v1236_v52 = vmul.f32 %v1220_v50, %v1220_v50 }
 0x400   :  { %v1219_v56 = vsub.f32 %v992_v41, %v2512_v40  ;;  %v1234_v11 = vmul.f32 %v1218_v57, %v1218_v57 }
 0x401   :  { %v1237_v48 = vmul.f32 %v1221_v39, %v1221_v39  ;;  %v1252_v45 = vmax.f32 %v1236_v52, 1e-12  ;;  %1686 = vmatpush3.bf16.xpose.msra.mxu1 %v1685_v14 }
 0x402   :  { %v1977_v46 = vpop.eup %1976  ;;  %v1235_v18 = vmul.f32 %v1219_v56, %v1219_v56  ;;  %v1250_v54 = vmax.f32 %v1234_v11, 1e-12  ;;  %1687 = vmatprep.subr.bf16.mxu1 %v2008_v6 }
 0x403   :  { %v1979_v25 = vpop.eup %1978  ;;  %v1253_v10 = vmax.f32 %v1237_v48, 1e-12  ;;  %v997_v32 = vmul.f32 %v1977_v46, %v2578_v28  ;;  %v1268_v40 = vmin.f32 %v1252_v45, 1e+12 }
 0x404   :  { %v1981_v2 = vpop.eup %1980  ;;  %v1251_v49 = vmax.f32 %v1235_v18, 1e-12  ;;  %v995_v51 = vmul.f32 %v1979_v25, %v2581_v62  ;;  %v1266_v30 = vmin.f32 %v1250_v54, 1e+12 }
 0x405   :  { %v1983_v63 = vpop.eup %1982  ;;  %v1269_v58 = vmin.f32 %v1253_v10, 1e+12  ;;  %v998_v61 = vmul.f32 %v1981_v2, %v2585_v36  ;;  %v1224_v31 = vsub.f32 %v997_v32, %v2527_v17 }
 0x406   :  { %v1267_v20 = vmin.f32 %v1251_v49, 1e+12  ;;  %v996_v14 = vmul.f32 %v1983_v63, %v2589_v55  ;;  %v1222_v4 = vsub.f32 %v995_v51, %v2523_v43 }
 0x407   :  { %v1697_v22 = vpack.c.bf16 %v1269_v58, %v1268_v40  ;;  %v1225_v28 = vsub.f32 %v998_v61, %v2525_v16  ;;  %v1240_v38 = vmul.f32 %v1224_v31, %v1224_v31 }
 0x408   :  { %v1694_v42 = vpack.c.bf16 %v1267_v20, %v1266_v30  ;;  %v1223_v62 = vsub.f32 %v996_v14, %v2521_v24  ;;  %v1238_v13 = vmul.f32 %v1222_v4, %v1222_v4  ;;  %v1274_v24 = vlaneseq }
 0x409   :  { %v1241_v19 = vmul.f32 %v1225_v28, %v1225_v28  ;;  %v1256_v15 = vmax.f32 %v1240_v38, 1e-12  ;;  %1689 = vmatpush3.bf16.xpose.msra.mxu1 %v1688_v37 }
 0x40a   :  { %v1239_v36 = vmul.f32 %v1223_v62, %v1223_v62  ;;  %v1254_v33 = vmax.f32 %v1238_v13, 1e-12  ;;  %1690 = vmatprep.subr.bf16.mxu1 %v2008_v6  ;;  %v1275_v23 = vand.u32 127, %v1274_v24 }
 0x40b   :  { %v1257_v17 = vmax.f32 %v1241_v19, 1e-12  ;;  %v1272_v59 = vmin.f32 %v1256_v15, 1e+12 }
 0x40c   :  { %v1255_v60 = vmax.f32 %v1239_v36, 1e-12  ;;  %v1270_v5 = vmin.f32 %v1254_v33, 1e+12  ;;  %vm1276_vm3 = vcmp.lt.s32.totalorder %v1275_v23, 16 }
 0x40d   :  { %v1273_v55 = vmin.f32 %v1257_v17, 1e+12 }
 0x40e   :  { %v1271_v43 = vmin.f32 %v1255_v60, 1e+12 }
 0x40f   :  { %v1703_v47 = vpack.c.bf16 %v1273_v55, %v1272_v59 }
 0x410   :  { %v1700_v16 = vpack.c.bf16 %v1271_v43, %v1270_v5 }
 0x411   :  { %1692 = vmatpush3.bf16.xpose.msra.mxu1 %v1691_v29 }
 0x412   :  { %1693 = vmatprep.subr.bf16.mxu1 %v2008_v6 }
 0x419   :  { %1695 = vmatpush3.bf16.xpose.msra.mxu1 %v1694_v42 }
 0x41a   :  { %1696 = vmatprep.subr.bf16.mxu1 %v2008_v6 }
 0x421   :  { %1698 = vmatpush3.bf16.xpose.msra.mxu1 %v1697_v22 }
 0x422   :  { %1699 = vmatprep.subr.bf16.mxu1 %v2008_v6 }
 0x429   :  { %1701 = vmatpush3.bf16.xpose.msra.mxu1 %v1700_v16 }
 0x42a   :  { %1702 = vmatprep.subr.bf16.mxu1 %v2008_v6 }
 0x431   :  { %1704 = vmatpush3.bf16.xpose.msra.mxu1 %v1703_v47 }
 0x438   :  { %1679 = vmatmul.mubr.msk.f32.vlgmr.msra.gmra.mrb[32].mxu1 %vm1276_vm3, %v2011_v7 }
 0x50b   :  { %v1345_v1 = vpop.f32.mrb[32].mxu1 }
 0x50c   :  { %v1349_v35 = vmul.f32 0.0625, %v1345_v1  ;;  %v1680_v8 = vpop.f32.mrb[33].mxu1 }
 0x50e   :  { %v1350_v9 = vadd.f32 5e-12, %v1349_v35 }
 0x510   :  { %1351 = vst [vmem:[#allocation2] sm:$0x1] %v1350_v9 }
 0x511   :  { %1995 = shalt.err (!%p1992_p4)
}
 0x512   :  { %s1996_s21 = scalar_lea.hbm %s2651_s7, 16 }
 0x513   :  { %p1997_p5 = scmp.ne.s32.totalorder %s2651_s7, %s1996_s21  ;;  %p2000_p6 = scmp.lt.u32.totalorder %s1996_s21, %s2651_s7 }
 0x515   :  { %p2002_p7 = pnand %p2000_p6, %p1997_p5 }
 0x517   :  { %2005 = shalt.err (!%p2002_p7)
}
 0x518   :  { %1361 = dma.vmem_to_hbm [thread:$0]  %s1359_s17, 16, %s2651_s7, [#allocation3]  }
 0x519   :  { %2006 = dma.done.wait [#allocation3], 16  }
 0x51a   :  { %2007 = vsyncadd [#allocation3], 4294967280 }
 0x51b   :  { %1365 = vsyncpa [#allocation3], 1 }

</bundles_post_ra>
